<compile_context>
chip_gen: v7x
topology: tpu7x:2x2x1
jax: 0.10.0
libtpu: 0.0.40
codegen_flags: <defaults>
</compile_context>

<pallas_src>
import functools

import jax
import jax.numpy as jnp
from jax.experimental import pallas as pl
from jax.experimental.pallas import tpu as pltpu

GRU_WEIGHT_DTYPE = jnp.bfloat16   # weight-DMA saving; biases/accum stay f32


# ---------------------------------------------------------------------------
# Pallas kernels
# ---------------------------------------------------------------------------
def _convu_bn_leaky_pool_kernel(x_ref, w_ref, scale_ref, shift_ref,
                                y_ref, pooled_ref, acc_ref, *, inv_hw):
    """Fused 1x1 conv (matmul) + eval-BN affine + LeakyReLU(0.1) + mean pool."""
    t = pl.program_id(1)

    @pl.when(t == 0)
    def _():
        acc_ref[...] = jnp.zeros_like(acc_ref)

    x = x_ref[0].astype(jnp.float32)                      # (Cin, hw)
    w = w_ref[...].astype(jnp.float32)                    # (C, Cin)
    y = jnp.dot(w, x, preferred_element_type=jnp.float32)  # (C, hw) on the MXU
    y = y * scale_ref[...] + shift_ref[...]               # folded BN affine
    y = jnp.where(y > 0.0, y, 0.1 * y)                    # LeakyReLU(0.1)
    y_ref[0] = y.astype(y_ref.dtype)                      # x1 map (needed later)
    acc_ref[...] += jnp.sum(y, axis=-1, keepdims=True)    # (C, 1) partial sum

    @pl.when(t == pl.num_programs(1) - 1)
    def _():
        pooled_ref[0] = (acc_ref[...] * inv_hw).astype(pooled_ref.dtype)


def _relu_pool_kernel(x_ref, pooled_ref, acc_ref, *, inv_hw):
    """ReLU + global mean pool (conv bias already folded into the conv)."""
    t = pl.program_id(1)

    @pl.when(t == 0)
    def _():
        acc_ref[...] = jnp.zeros_like(acc_ref)

    y = jnp.maximum(x_ref[0].astype(jnp.float32), 0.0)    # (C, hw)
    acc_ref[...] += jnp.sum(y, axis=-1, keepdims=True)

    @pl.when(t == pl.num_programs(1) - 1)
    def _():
        pooled_ref[0] = (acc_ref[...] * inv_hw).astype(pooled_ref.dtype)


def _conv1x1_relu_pool_kernel(x_ref, w_ref, b_ref, pooled_ref, acc_ref, *,
                              inv_hw):
    """Fused 1x1 conv (matmul) + bias + ReLU + global mean pool."""
    t = pl.program_id(1)

    @pl.when(t == 0)
    def _():
        acc_ref[...] = jnp.zeros_like(acc_ref)

    x = x_ref[0].astype(jnp.float32)                      # (C, hw)
    w = w_ref[...].astype(jnp.float32)                    # (Cout, C)
    y = jnp.dot(w, x, preferred_element_type=jnp.float32) + b_ref[...]
    y = jnp.maximum(y, 0.0)
    acc_ref[...] += jnp.sum(y, axis=-1, keepdims=True)    # ReLU map never hits HBM

    @pl.when(t == pl.num_programs(1) - 1)
    def _():
        pooled_ref[0] = (acc_ref[...] * inv_hw).astype(pooled_ref.dtype)


def _gru4_kernel(x_ref, h0_ref, wx_ref, bx_ref, wh_ref, bh_ref,
                 wu_ref, bu_ref, wout_ref, bout_ref, y_ref, h_sc):
    """All four GRU_blocks fused: grid step g = GRU g, h carried in VMEM."""
    g = pl.program_id(0)

    @pl.when(g == 0)
    def _():
        h_sc[...] = h0_ref[...].astype(jnp.float32)

    C = wu_ref.shape[-1]
    x = x_ref[0].astype(jnp.float32)                      # (B, C)
    h = h_sc[...]                                         # (B, C)

    def mm(a, w):
        return jnp.dot(a, w.astype(jnp.float32),
                       preferred_element_type=jnp.float32)

    def sigmoid(v):
        # exp goes to the EUP; approx reciprocal keeps the divide on the EUP too.
        return pl.reciprocal(1.0 + jnp.exp(-v), approx=True)

    gx = mm(x, wx_ref[0]) + bx_ref[0]                     # (B, 3C) = [z | r | t]
    gh = mm(h, wh_ref[0]) + bh_ref[0]                     # (B, 2C) = [z | r]

    z = sigmoid(gx[:, :C] + gh[:, :C])
    r = sigmoid(gx[:, C:2 * C] + gh[:, C:2 * C])
    h_hat = jnp.tanh(gx[:, 2 * C:] + mm(r * h, wu_ref[0]) + bu_ref[0])
    h_t = (1.0 - z) * h + z * h_hat
    y = mm(h_t, wout_ref[0]) + bout_ref[0]

    y_ref[0] = y.astype(y_ref.dtype)
    h_sc[...] = h_t                                       # carry to next GRU


# ---------------------------------------------------------------------------
# Pallas wrappers
# ---------------------------------------------------------------------------
def _pick_hw_tile(hw):
    """Lane-dense HW tile, bounded so blocks stay well inside VMEM (v7x guard)."""
    if hw <= 2048:
        return hw
    for t in (2048, 1024, 512, 256, 128):
        if hw % t == 0:
            return t
    return hw


def convu_bn_leaky_pool(x, w, scale, shift):
    """x:(B,Cin,H,W), w:(C,Cin) -> (x1 map (B,C,H,W), pooled (B,C) f32)."""
    B, Cin, H, W = x.shape
    C = w.shape[0]
    HW = H * W
    hw_t = _pick_hw_tile(HW)
    n_hw = HW // hw_t

    y3, pooled = pl.pallas_call(
        functools.partial(_convu_bn_leaky_pool_kernel, inv_hw=1.0 / HW),
        out_shape=(jax.ShapeDtypeStruct((B, C, HW), x.dtype),
                   jax.ShapeDtypeStruct((B, C, 1), jnp.float32)),
        grid_spec=pltpu.PrefetchScalarGridSpec(
            num_scalar_prefetch=0,
            grid=(B, n_hw),
            in_specs=[pl.BlockSpec((1, Cin, hw_t), lambda b, t: (b, 0, t)),
                      pl.BlockSpec((C, Cin), lambda b, t: (0, 0)),
                      pl.BlockSpec((C, 1), lambda b, t: (0, 0)),
                      pl.BlockSpec((C, 1), lambda b, t: (0, 0))],
            out_specs=[pl.BlockSpec((1, C, hw_t), lambda b, t: (b, 0, t)),
                       pl.BlockSpec((1, C, 1), lambda b, t: (b, 0, 0))],
            scratch_shapes=[pltpu.VMEM((C, 1), jnp.float32)]),
        compiler_params=pltpu.CompilerParams(
            dimension_semantics=("parallel", "arbitrary")),
    )(x.reshape(B, Cin, HW), w, scale, shift)
    return y3.reshape(B, C, H, W), pooled[:, :, 0]


def relu_pool(x):
    """x:(B,C,H,W) -> mean-pool(relu(x)) as (B,C) f32."""
    B, C, H, W = x.shape
    HW = H * W
    hw_t = _pick_hw_tile(HW)
    n_hw = HW // hw_t

    pooled = pl.pallas_call(
        functools.partial(_relu_pool_kernel, inv_hw=1.0 / HW),
        out_shape=jax.ShapeDtypeStruct((B, C, 1), jnp.float32),
        grid_spec=pltpu.PrefetchScalarGridSpec(
            num_scalar_prefetch=0,
            grid=(B, n_hw),
            in_specs=[pl.BlockSpec((1, C, hw_t), lambda b, t: (b, 0, t))],
            out_specs=pl.BlockSpec((1, C, 1), lambda b, t: (b, 0, 0)),
            scratch_shapes=[pltpu.VMEM((C, 1), jnp.float32)]),
        compiler_params=pltpu.CompilerParams(
            dimension_semantics=("parallel", "arbitrary")),
    )(x.reshape(B, C, HW))
    return pooled[:, :, 0]


def conv1x1_relu_pool(x, w, b):
    """x:(B,C,H,W), w:(Cout,C), b:(Cout,1) -> mean-pool(relu(w@x+b)) as (B,Cout)."""
    B, C, H, W = x.shape
    Cout = w.shape[0]
    HW = H * W
    hw_t = _pick_hw_tile(HW)
    n_hw = HW // hw_t

    pooled = pl.pallas_call(
        functools.partial(_conv1x1_relu_pool_kernel, inv_hw=1.0 / HW),
        out_shape=jax.ShapeDtypeStruct((B, Cout, 1), jnp.float32),
        grid_spec=pltpu.PrefetchScalarGridSpec(
            num_scalar_prefetch=0,
            grid=(B, n_hw),
            in_specs=[pl.BlockSpec((1, C, hw_t), lambda b, t: (b, 0, t)),
                      pl.BlockSpec((Cout, C), lambda b, t: (0, 0)),
                      pl.BlockSpec((Cout, 1), lambda b, t: (0, 0))],
            out_specs=pl.BlockSpec((1, Cout, 1), lambda b, t: (b, 0, 0)),
            scratch_shapes=[pltpu.VMEM((Cout, 1), jnp.float32)]),
        compiler_params=pltpu.CompilerParams(
            dimension_semantics=("parallel", "arbitrary")),
    )(x.reshape(B, C, HW), w, b)
    return pooled[:, :, 0]


def gru4(f, x_stack, h0):
    """Fused 4x GRU_block. x_stack:(4,B,C), h0:(B,C) -> y:(4,B,K) f32."""
    G, B, C = x_stack.shape
    K = f["wout"].shape[-1]

    w_bytes = (f["wx"].size + f["wh"].size + f["wu"].size
               + f["wout"].size) * f["wx"].dtype.itemsize
    b_bytes = 4 * (f["bx"].size + f["bh"].size + f["bu"].size + f["bout"].size)
    act_bytes = 4 * (x_stack.size + h0.size + G * B * K)
    cost = pl.CostEstimate(
        flops=int(2 * G * B * C * (3 * C + 2 * C + C + K)),
        transcendentals=int(5 * G * B * C),
        bytes_accessed=int(w_bytes + b_bytes + act_bytes))

    y = pl.pallas_call(
        _gru4_kernel,
        out_shape=jax.ShapeDtypeStruct((G, B, K), jnp.float32),
        grid_spec=pltpu.PrefetchScalarGridSpec(
            num_scalar_prefetch=0,
            grid=(G,),
            in_specs=[
                pl.BlockSpec((1, B, C), lambda g: (g, 0, 0)),        # x_t
                pl.BlockSpec((B, C), lambda g: (0, 0)),              # h0 (resident)
                pl.BlockSpec((1, C, 3 * C), lambda g: (g, 0, 0)),    # wx_cat (bf16)
                pl.BlockSpec((1, 1, 3 * C), lambda g: (g, 0, 0)),    # bx_cat
                pl.BlockSpec((1, C, 2 * C), lambda g: (g, 0, 0)),    # wh_cat (bf16)
                pl.BlockSpec((1, 1, 2 * C), lambda g: (g, 0, 0)),    # bh_cat
                pl.BlockSpec((1, C, C), lambda g: (g, 0, 0)),        # wu (bf16)
                pl.BlockSpec((1, 1, C), lambda g: (g, 0, 0)),        # bu
                pl.BlockSpec((1, C, K), lambda g: (g, 0, 0)),        # wout (bf16)
                pl.BlockSpec((1, 1, K), lambda g: (g, 0, 0)),        # bout
            ],
            out_specs=pl.BlockSpec((1, B, K), lambda g: (g, 0, 0)),
            scratch_shapes=[pltpu.VMEM((B, C), jnp.float32)]),       # h carry
        compiler_params=pltpu.CompilerParams(
            dimension_semantics=("arbitrary",)),
        cost_estimate=cost,
    )(x_stack, h0, f["wx"], f["bx"], f["wh"], f["bh"],
      f["wu"], f["bu"], f["wout"], f["bout"])
    return y


# ---------------------------------------------------------------------------
# Conv helper (XLA) and parameters
# ---------------------------------------------------------------------------
def conv2d(x, w, b=None, *, dilation=1, padding=0):
    # TODO(synk): dilated 3x3 convolutions handled by XLA, not a Pallas kernel.
    out = jax.lax.conv_general_dilated(
        x, w,
        window_strides=(1, 1),
        padding=[(padding, padding), (padding, padding)],
        rhs_dilation=(dilation, dilation),
        dimension_numbers=("NCHW", "OIHW", "NCHW"))
    if b is not None:
        out = out + b[None, :, None, None]
    return out


def init_params(key, num_classes, in_channel, channel):
    ks = jax.random.split(key, 16)

    def w(k, shape, scale=0.1):
        return scale * jax.random.normal(k, shape, dtype=jnp.float32)

    params = {
        # conv_u: Conv(in->ch, k=1, bias=False) + BN + LeakyReLU(0.1)
        "w_convu": w(ks[0], (channel, in_channel, 1, 1)),
        "bn_gamma": jnp.ones((channel,), jnp.float32),
        "bn_beta": jnp.zeros((channel,), jnp.float32),
        "bn_mean": jnp.zeros((channel,), jnp.float32),
        "bn_var": jnp.ones((channel,), jnp.float32),
        # dilated convs (small nonzero biases to exercise the bias paths)
        "w_d1": w(ks[1], (channel, in_channel, 3, 3)),
        "b_d1": w(ks[9], (channel,), 0.05),
        "w_d2": w(ks[2], (channel, channel, 3, 3)),
        "b_d2": w(ks[10], (channel,), 0.05),
        "w_d3": w(ks[3], (channel, channel, 3, 3)),
        "b_d3": w(ks[11], (channel,), 0.05),
        "w_1x1": w(ks[4], (channel, channel, 1, 1)),
        "b_1x1": w(ks[12], (channel,), 0.05),
    }

    def gru_params(k):
        kk = jax.random.split(k, 8)
        C, K = channel, num_classes
        return {
            "wx": w(kk[0], (3, C, C)),   # [x_z, x_r, t]
            "bx": w(kk[1], (3, 1, C)),
            "wh": w(kk[2], (2, C, C)),   # [h_z, h_r]
            "bh": w(kk[3], (2, 1, C)),
            "wu": w(kk[4], (C, C)),
            "bu": w(kk[5], (1, C)),
            "wout": w(kk[6], (C, K)),
            "bout": w(kk[7], (1, K)),
        }

    params["gru1"] = gru_params(ks[5])
    params["gru2"] = gru_params(ks[6])
    params["gru3"] = gru_params(ks[7])
    params["gru4"] = gru_params(ks[8])
    return params


def prepare_fused_params(params, weights_dtype=GRU_WEIGHT_DTYPE):
    """Fold BN, flatten 1x1 convs to matrices, concat+stack GRU gate weights."""
    eps = 1e-5
    scale = params["bn_gamma"] / jnp.sqrt(params["bn_var"] + eps)
    shift = params["bn_beta"] - params["bn_mean"] * scale
    gs = [params[f"gru{i}"] for i in (1, 2, 3, 4)]

    fused = {
        "w_convu": params["w_convu"][:, :, 0, 0],               # (C, Cin)
        "scale": scale[:, None],                                 # (C, 1)
        "shift": shift[:, None],                                 # (C, 1)
        "w_1x1": params["w_1x1"][:, :, 0, 0],                    # (C, C)
        "b_1x1": params["b_1x1"][:, None],                       # (C, 1)
        # GRU weights: concat gates along output dim, stack the 4 GRUs.
        "wx": jnp.stack([jnp.concatenate([g["wx"][0], g["wx"][1], g["wx"][2]],
                                         axis=1) for g in gs]).astype(weights_dtype),
        "bx": jnp.stack([jnp.concatenate([g["bx"][0], g["bx"][1], g["bx"][2]],
                                         axis=1) for g in gs]),
        "wh": jnp.stack([jnp.concatenate([g["wh"][0], g["wh"][1]],
                                         axis=1) for g in gs]).astype(weights_dtype),
        "bh": jnp.stack([jnp.concatenate([g["bh"][0], g["bh"][1]],
                                         axis=1) for g in gs]),
        "wu": jnp.stack([g["wu"] for g in gs]).astype(weights_dtype),
        "bu": jnp.stack([g["bu"] for g in gs]),
        "wout": jnp.stack([g["wout"] for g in gs]).astype(weights_dtype),
        "bout": jnp.stack([g["bout"] for g in gs]),
    }
    return fused


# ---------------------------------------------------------------------------
# MRGblock_res forward (Pallas-backed)
# ---------------------------------------------------------------------------
def mrgblock_res_forward(params, x):
    f = prepare_fused_params(params)

    # conv_u (1x1 conv + BN + LeakyReLU) fused with its pool; emits the x1 map.
    x1, h_t = convu_bn_leaky_pool(x, f["w_convu"], f["scale"], f["shift"])

    # branch 1: relu(dilate1(x)) -> pool   (bias folded into the conv epilogue)
    d1 = conv2d(x, params["w_d1"], params["b_d1"], dilation=1, padding=1)
    x_t1 = relu_pool(d1)

    # branch 2: relu(conv1x1(dilate2(x1))) -> pool  (1x1 fused into the pool)
    d2 = conv2d(x1, params["w_d2"], params["b_d2"], dilation=3, padding=3)
    x_t2 = conv1x1_relu_pool(d2, f["w_1x1"], f["b_1x1"])

    # branch 3: relu(conv1x1(dilate2(dilate1(x)))) -> pool
    d2b = conv2d(d1, params["w_d2"], params["b_d2"], dilation=3, padding=3)
    x_t3 = conv1x1_relu_pool(d2b, f["w_1x1"], f["b_1x1"])

    # branch 4: relu(conv1x1(dilate3(dilate2(dilate1(x))))) -> pool
    d3b = conv2d(d2b, params["w_d3"], params["b_d3"], dilation=5, padding=5)
    x_t4 = conv1x1_relu_pool(d3b, f["w_1x1"], f["b_1x1"])

    # All four GRUs in one pallas_call, chaining the hidden state in VMEM.
    x_stack = jnp.stack([x_t1, x_t2, x_t3, x_t4], axis=0)   # (4, B, C)
    ys = gru4(f, x_stack, h_t)                               # (4, B, K)
    return ys[0], ys[1], ys[2], ys[3]


# ---------------------------------------------------------------------------
# Pure-JAX reference for verification
# ---------------------------------------------------------------------------
def _gru_ref(p, x_t, h):
    def mm(a, w):
        return jnp.dot(a, w)

    def sig(v):
        return 1.0 / (1.0 + jnp.exp(-v))

    z = sig(mm(x_t, p["wx"][0]) + p["bx"][0] + mm(h, p["wh"][0]) + p["bh"][0])
    r = sig(mm(x_t, p["wx"][1]) + p["bx"][1] + mm(h, p["wh"][1]) + p["bh"][1])
    h_hat = jnp.tanh(mm(x_t, p["wx"][2]) + p["bx"][2]
                     + mm(r * h, p["wu"]) + p["bu"])
    h_t = (1.0 - z) * h + z * h_hat
    y = mm(h_t, p["wout"]) + p["bout"]
    return y, h_t


def mrgblock_res_ref(params, x):
    eps = 1e-5
    scale = params["bn_gamma"] / jnp.sqrt(params["bn_var"] + eps)
    shift = params["bn_beta"] - params["bn_mean"] * scale

    def leaky(v):
        return jnp.where(v > 0.0, v, 0.1 * v)

    def pool(v):
        return jnp.mean(v, axis=(2, 3))

    x1 = leaky(conv2d(x, params["w_convu"]) * scale[None, :, None, None]
               + shift[None, :, None, None])
    h_t = pool(x1)

    d1 = conv2d(x, params["w_d1"], params["b_d1"], dilation=1, padding=1)
    x_t = pool(jnp.maximum(d1, 0.0))
    y1, x_out = _gru_ref(params["gru1"], x_t, h_t)

    d2 = conv2d(x1, params["w_d2"], params["b_d2"], dilation=3, padding=3)
    c2 = conv2d(d2, params["w_1x1"], params["b_1x1"])
    x_t2 = pool(jnp.maximum(c2, 0.0))
    y2, x_out = _gru_ref(params["gru2"], x_t2, x_out)

    d2b = conv2d(d1, params["w_d2"], params["b_d2"], dilation=3, padding=3)
    c3 = conv2d(d2b, params["w_1x1"], params["b_1x1"])
    x_t3 = pool(jnp.maximum(c3, 0.0))
    y3, x_out = _gru_ref(params["gru3"], x_t3, x_out)

    d3b = conv2d(d2b, params["w_d3"], params["b_d3"], dilation=5, padding=5)
    c4 = conv2d(d3b, params["w_1x1"], params["b_1x1"])
    x_t4 = pool(jnp.maximum(c4, 0.0))
    y4, x_out = _gru_ref(params["gru4"], x_t4, x_out)

    return y1, y2, y3, y4


if __name__ == "__main__":
    key = jax.random.PRNGKey(0)
    k_p, k_x = jax.random.split(key)

    B, Cin, C, H, W, K = 2, 4, 32, 16, 16, 10
    params = init_params(k_p, K, Cin, C)
    x = jax.random.normal(k_x, (B, Cin, H, W), dtype=jnp.float32)

    fwd = jax.jit(mrgblock_res_forward)
    ys = jax.block_until_ready(fwd(params, x))

    ys_ref = mrgblock_res_ref(params, x)
    for i, (y, yr) in enumerate(zip(ys, ys_ref)):
        assert y.shape == (B, K), f"y{i + 1} shape {y.shape}"
        max_err = float(jnp.max(jnp.abs(y - yr)))
        # bf16 gate weights + default MXU precision vs f32 reference.
        assert jnp.allclose(y, yr, atol=3e-3, rtol=3e-2), \
            f"mismatch in y{i + 1}: max|diff|={max_err}"

    print("KERNEL_OK")
</pallas_src>

<mosaic_0001>
module attributes {stable_mosaic.version = 11 : i64} {
  func.func @_convu_bn_leaky_pool_kernel(%arg0: i32, %arg1: i32, %arg2: memref<1x4x256xf32, #tpu.memory_space<vmem>>, %arg3: memref<32x4xf32, #tpu.memory_space<vmem>>, %arg4: memref<32x1xf32, #tpu.memory_space<vmem>>, %arg5: memref<32x1xf32, #tpu.memory_space<vmem>>, %arg6: memref<1x32x256xf32, #tpu.memory_space<vmem>>, %arg7: memref<1x32x1xf32, #tpu.memory_space<vmem>>, %arg8: memref<32x1xf32, #tpu.memory_space<vmem>>) attributes {dimension_semantics = [#tpu.dimension_semantics<parallel>, #tpu.dimension_semantics<arbitrary>], iteration_bounds = array<i64: 2, 1>, scalar_prefetch = 0 : i64, scratch_operands = 1 : i64, tpu.core_type = #tpu.core_type<tc>, window_params = [{transform_indices = @transform_0, window_bounds = array<i64: 1, 4, 256>}, {pipeline_mode = #tpu.pipeline_mode<synchronous>, transform_indices = @transform_1, window_bounds = array<i64: 32, 4>}, {pipeline_mode = #tpu.pipeline_mode<synchronous>, transform_indices = @transform_2, window_bounds = array<i64: 32, 1>}, {pipeline_mode = #tpu.pipeline_mode<synchronous>, transform_indices = @transform_3, window_bounds = array<i64: 32, 1>}, {transform_indices = @transform_4, window_bounds = array<i64: 1, 32, 256>}, {transform_indices = @transform_5, window_bounds = array<i64: 1, 32, 1>}]} {
    %c0_i32 = arith.constant 0 : i32
    %0 = arith.cmpi eq, %arg1, %c0_i32 : i32
    %1 = arith.extui %0 : i1 to i32
    %c0_i32_0 = arith.constant 0 : i32
    %2 = arith.cmpi ne, %1, %c0_i32_0 : i32
    scf.if %2 {
      %cst_21 = arith.constant 0.000000e+00 : f32
      %29 = vector.broadcast %cst_21 : f32 to vector<32x1xf32>
      %c0_22 = arith.constant 0 : index
      %c0_23 = arith.constant 0 : index
      %30 = vector.load %arg8[%c0_22, %c0_23] : memref<32x1xf32, #tpu.memory_space<vmem>>, vector<32x1xf32>
      tpu.vector_store %arg8[%c0_22, %c0_23], %29 {strides = array<i32>} : memref<32x1xf32, #tpu.memory_space<vmem>>, vector<32x1xf32>,
    } else {
    }
    %c0 = arith.constant 0 : index
    %c0_1 = arith.constant 0 : index
    %c0_2 = arith.constant 0 : index
    %3 = vector.load %arg2[%c0, %c0_1, %c0_2] : memref<1x4x256xf32, #tpu.memory_space<vmem>>, vector<1x4x256xf32>
    %4 = vector.shape_cast %3 : vector<1x4x256xf32> to vector<4x256xf32>
    %c0_3 = arith.constant 0 : index
    %c0_4 = arith.constant 0 : index
    %5 = vector.load %arg3[%c0_3, %c0_4] : memref<32x4xf32, #tpu.memory_space<vmem>>, vector<32x4xf32>
    %cst = arith.constant dense<0.000000e+00> : vector<32x256xf32>
    %6 = tpu.matmul %5, %4, %cst {dimension_numbers = #tpu.dot_dimension_numbers<[1], [0], [0], [1], [0, 0, 1, 1], [], []>} : vector<32x4xf32>, vector<4x256xf32>, vector<32x256xf32> -> vector<32x256xf32>
    %c0_5 = arith.constant 0 : index
    %c0_6 = arith.constant 0 : index
    %7 = vector.load %arg4[%c0_5, %c0_6] : memref<32x1xf32, #tpu.memory_space<vmem>>, vector<32x1xf32>
    %8 = vector.broadcast %7 : vector<32x1xf32> to vector<32x256xf32>
    %9 = arith.mulf %6, %8 : vector<32x256xf32>
    %c0_7 = arith.constant 0 : index
    %c0_8 = arith.constant 0 : index
    %10 = vector.load %arg5[%c0_7, %c0_8] : memref<32x1xf32, #tpu.memory_space<vmem>>, vector<32x1xf32>
    %11 = vector.broadcast %10 : vector<32x1xf32> to vector<32x256xf32>
    %12 = arith.addf %9, %11 : vector<32x256xf32>
    %cst_9 = arith.constant 0.000000e+00 : f32
    %13 = vector.broadcast %cst_9 : f32 to vector<32x256xf32>
    %14 = arith.cmpf ogt, %12, %13 : vector<32x256xf32>
    %cst_10 = arith.constant 1.000000e-01 : f32
    %15 = vector.broadcast %cst_10 : f32 to vector<32x256xf32>
    %16 = arith.mulf %15, %12 : vector<32x256xf32>
    %17 = arith.select %14, %12, %16 : vector<32x256xi1>, vector<32x256xf32>
    %c0_11 = arith.constant 0 : index
    %c0_12 = arith.constant 0 : index
    %c0_13 = arith.constant 0 : index
    %18 = vector.load %arg6[%c0_11, %c0_12, %c0_13] : memref<1x32x256xf32, #tpu.memory_space<vmem>>, vector<1x32x256xf32>
    %19 = vector.shape_cast %18 : vector<1x32x256xf32> to vector<32x256xf32>
    %20 = vector.shape_cast %17 : vector<32x256xf32> to vector<1x32x256xf32>
    tpu.vector_store %arg6[%c0_11, %c0_12, %c0_13], %20 {strides = array<i32>} : memref<1x32x256xf32, #tpu.memory_space<vmem>>, vector<1x32x256xf32>,
    %c0_14 = arith.constant 0 : index
    %c0_15 = arith.constant 0 : index
    %21 = vector.load %arg8[%c0_14, %c0_15] : memref<32x1xf32, #tpu.memory_space<vmem>>, vector<32x1xf32>
    %cst_16 = arith.constant dense<0.000000e+00> : vector<32xf32>
    %22 = vector.multi_reduction <add>, %17, %cst_16 [1] : vector<32x256xf32> to vector<32xf32>
    %23 = vector.shape_cast %22 : vector<32xf32> to vector<32x1xf32>
    %24 = arith.addf %21, %23 : vector<32x1xf32>
    %c0_17 = arith.constant 0 : index
    %c0_18 = arith.constant 0 : index
    %25 = vector.load %arg8[%c0_17, %c0_18] : memref<32x1xf32, #tpu.memory_space<vmem>>, vector<32x1xf32>
    tpu.vector_store %arg8[%c0_17, %c0_18], %24 {strides = array<i32>} : memref<32x1xf32, #tpu.memory_space<vmem>>, vector<32x1xf32>,
    %c0_i32_19 = arith.constant 0 : i32
    %26 = arith.cmpi eq, %arg1, %c0_i32_19 : i32
    %27 = arith.extui %26 : i1 to i32
    %c0_i32_20 = arith.constant 0 : i32
    %28 = arith.cmpi ne, %27, %c0_i32_20 : i32
    scf.if %28 {
      %c0_21 = arith.constant 0 : index
      %c0_22 = arith.constant 0 : index
      %29 = vector.load %arg8[%c0_21, %c0_22] : memref<32x1xf32, #tpu.memory_space<vmem>>, vector<32x1xf32>
      %cst_23 = arith.constant 3.906250e-03 : f32
      %30 = vector.broadcast %cst_23 : f32 to vector<32x1xf32>
      %31 = arith.mulf %29, %30 : vector<32x1xf32>
      %c0_24 = arith.constant 0 : index
      %c0_25 = arith.constant 0 : index
      %c0_26 = arith.constant 0 : index
      %32 = vector.load %arg7[%c0_24, %c0_25, %c0_26] : memref<1x32x1xf32, #tpu.memory_space<vmem>>, vector<1x32x1xf32>
      %33 = vector.shape_cast %32 : vector<1x32x1xf32> to vector<32x1xf32>
      %34 = vector.shape_cast %31 : vector<32x1xf32> to vector<1x32x1xf32>
      tpu.vector_store %arg7[%c0_24, %c0_25, %c0_26], %34 {strides = array<i32>} : memref<1x32x1xf32, #tpu.memory_space<vmem>>, vector<1x32x1xf32>,
    } else {
    }
    return
  }
  func.func @transform_0(%arg0: i32, %arg1: i32) -> (i32, i32, i32) {
    %c0_i32 = arith.constant 0 : i32
    %c0_i32_0 = arith.constant 0 : i32
    return %arg0, %c0_i32, %arg1 : i32, i32, i32
  }
  func.func @transform_1(%arg0: i32, %arg1: i32) -> (i32, i32) {
    %c0_i32 = arith.constant 0 : i32
    %c0_i32_0 = arith.constant 0 : i32
    %c0_i32_1 = arith.constant 0 : i32
    return %c0_i32, %c0_i32_0 : i32, i32
  }
  func.func @transform_2(%arg0: i32, %arg1: i32) -> (i32, i32) {
    %c0_i32 = arith.constant 0 : i32
    %c0_i32_0 = arith.constant 0 : i32
    %c0_i32_1 = arith.constant 0 : i32
    return %c0_i32, %c0_i32_0 : i32, i32
  }
  func.func @transform_3(%arg0: i32, %arg1: i32) -> (i32, i32) {
    %c0_i32 = arith.constant 0 : i32
    %c0_i32_0 = arith.constant 0 : i32
    %c0_i32_1 = arith.constant 0 : i32
    return %c0_i32, %c0_i32_0 : i32, i32
  }
  func.func @transform_4(%arg0: i32, %arg1: i32) -> (i32, i32, i32) {
    %c0_i32 = arith.constant 0 : i32
    %c0_i32_0 = arith.constant 0 : i32
    return %arg0, %c0_i32, %arg1 : i32, i32, i32
  }
  func.func @transform_5(%arg0: i32, %arg1: i32) -> (i32, i32, i32) {
    %c0_i32 = arith.constant 0 : i32
    %c0_i32_0 = arith.constant 0 : i32
    %c0_i32_1 = arith.constant 0 : i32
    return %arg0, %c0_i32, %c0_i32_0 : i32, i32, i32
  }
}

module attributes {stable_mosaic.version = 11 : i64} {
  func.func @_conv1x1_relu_pool_kernel(%arg0: i32, %arg1: i32, %arg2: memref<1x32x256xf32, #tpu.memory_space<vmem>>, %arg3: memref<32x32xf32, #tpu.memory_space<vmem>>, %arg4: memref<32x1xf32, #tpu.memory_space<vmem>>, %arg5: memref<1x32x1xf32, #tpu.memory_space<vmem>>, %arg6: memref<32x1xf32, #tpu.memory_space<vmem>>) attributes {dimension_semantics = [#tpu.dimension_semantics<parallel>, #tpu.dimension_semantics<arbitrary>], iteration_bounds = array<i64: 2, 1>, scalar_prefetch = 0 : i64, scratch_operands = 1 : i64, tpu.core_type = #tpu.core_type<tc>, window_params = [{transform_indices = @transform_0, window_bounds = array<i64: 1, 32, 256>}, {pipeline_mode = #tpu.pipeline_mode<synchronous>, transform_indices = @transform_1, window_bounds = array<i64: 32, 32>}, {pipeline_mode = #tpu.pipeline_mode<synchronous>, transform_indices = @transform_2, window_bounds = array<i64: 32, 1>}, {transform_indices = @transform_3, window_bounds = array<i64: 1, 32, 1>}]} {
    %c0_i32 = arith.constant 0 : i32
    %0 = arith.cmpi eq, %arg1, %c0_i32 : i32
    %1 = arith.extui %0 : i1 to i32
    %c0_i32_0 = arith.constant 0 : i32
    %2 = arith.cmpi ne, %1, %c0_i32_0 : i32
    scf.if %2 {
      %cst_15 = arith.constant 0.000000e+00 : f32
      %20 = vector.broadcast %cst_15 : f32 to vector<32x1xf32>
      %c0_16 = arith.constant 0 : index
      %c0_17 = arith.constant 0 : index
      %21 = vector.load %arg6[%c0_16, %c0_17] : memref<32x1xf32, #tpu.memory_space<vmem>>, vector<32x1xf32>
      tpu.vector_store %arg6[%c0_16, %c0_17], %20 {strides = array<i32>} : memref<32x1xf32, #tpu.memory_space<vmem>>, vector<32x1xf32>,
    } else {
    }
    %c0 = arith.constant 0 : index
    %c0_1 = arith.constant 0 : index
    %c0_2 = arith.constant 0 : index
    %3 = vector.load %arg2[%c0, %c0_1, %c0_2] : memref<1x32x256xf32, #tpu.memory_space<vmem>>, vector<1x32x256xf32>
    %4 = vector.shape_cast %3 : vector<1x32x256xf32> to vector<32x256xf32>
    %c0_3 = arith.constant 0 : index
    %c0_4 = arith.constant 0 : index
    %5 = vector.load %arg3[%c0_3, %c0_4] : memref<32x32xf32, #tpu.memory_space<vmem>>, vector<32x32xf32>
    %cst = arith.constant dense<0.000000e+00> : vector<32x256xf32>
    %6 = tpu.matmul %5, %4, %cst {dimension_numbers = #tpu.dot_dimension_numbers<[1], [0], [0], [1], [0, 0, 1, 1], [], []>} : vector<32x32xf32>, vector<32x256xf32>, vector<32x256xf32> -> vector<32x256xf32>
    %c0_5 = arith.constant 0 : index
    %c0_6 = arith.constant 0 : index
    %7 = vector.load %arg4[%c0_5, %c0_6] : memref<32x1xf32, #tpu.memory_space<vmem>>, vector<32x1xf32>
    %8 = vector.broadcast %7 : vector<32x1xf32> to vector<32x256xf32>
    %9 = arith.addf %6, %8 : vector<32x256xf32>
    %cst_7 = arith.constant 0.000000e+00 : f32
    %10 = vector.broadcast %cst_7 : f32 to vector<32x256xf32>
    %11 = arith.maximumf %9, %10 : vector<32x256xf32>
    %c0_8 = arith.constant 0 : index
    %c0_9 = arith.constant 0 : index
    %12 = vector.load %arg6[%c0_8, %c0_9] : memref<32x1xf32, #tpu.memory_space<vmem>>, vector<32x1xf32>
    %cst_10 = arith.constant dense<0.000000e+00> : vector<32xf32>
    %13 = vector.multi_reduction <add>, %11, %cst_10 [1] : vector<32x256xf32> to vector<32xf32>
    %14 = vector.shape_cast %13 : vector<32xf32> to vector<32x1xf32>
    %15 = arith.addf %12, %14 : vector<32x1xf32>
    %c0_11 = arith.constant 0 : index
    %c0_12 = arith.constant 0 : index
    %16 = vector.load %arg6[%c0_11, %c0_12] : memref<32x1xf32, #tpu.memory_space<vmem>>, vector<32x1xf32>
    tpu.vector_store %arg6[%c0_11, %c0_12], %15 {strides = array<i32>} : memref<32x1xf32, #tpu.memory_space<vmem>>, vector<32x1xf32>,
    %c0_i32_13 = arith.constant 0 : i32
    %17 = arith.cmpi eq, %arg1, %c0_i32_13 : i32
    %18 = arith.extui %17 : i1 to i32
    %c0_i32_14 = arith.constant 0 : i32
    %19 = arith.cmpi ne, %18, %c0_i32_14 : i32
    scf.if %19 {
      %c0_15 = arith.constant 0 : index
      %c0_16 = arith.constant 0 : index
      %20 = vector.load %arg6[%c0_15, %c0_16] : memref<32x1xf32, #tpu.memory_space<vmem>>, vector<32x1xf32>
      %cst_17 = arith.constant 3.906250e-03 : f32
      %21 = vector.broadcast %cst_17 : f32 to vector<32x1xf32>
      %22 = arith.mulf %20, %21 : vector<32x1xf32>
      %c0_18 = arith.constant 0 : index
      %c0_19 = arith.constant 0 : index
      %c0_20 = arith.constant 0 : index
      %23 = vector.load %arg5[%c0_18, %c0_19, %c0_20] : memref<1x32x1xf32, #tpu.memory_space<vmem>>, vector<1x32x1xf32>
      %24 = vector.shape_cast %23 : vector<1x32x1xf32> to vector<32x1xf32>
      %25 = vector.shape_cast %22 : vector<32x1xf32> to vector<1x32x1xf32>
      tpu.vector_store %arg5[%c0_18, %c0_19, %c0_20], %25 {strides = array<i32>} : memref<1x32x1xf32, #tpu.memory_space<vmem>>, vector<1x32x1xf32>,
    } else {
    }
    return
  }
  func.func @transform_0(%arg0: i32, %arg1: i32) -> (i32, i32, i32) {
    %c0_i32 = arith.constant 0 : i32
    %c0_i32_0 = arith.constant 0 : i32
    return %arg0, %c0_i32, %arg1 : i32, i32, i32
  }
  func.func @transform_1(%arg0: i32, %arg1: i32) -> (i32, i32) {
    %c0_i32 = arith.constant 0 : i32
    %c0_i32_0 = arith.constant 0 : i32
    %c0_i32_1 = arith.constant 0 : i32
    return %c0_i32, %c0_i32_0 : i32, i32
  }
  func.func @transform_2(%arg0: i32, %arg1: i32) -> (i32, i32) {
    %c0_i32 = arith.constant 0 : i32
    %c0_i32_0 = arith.constant 0 : i32
    %c0_i32_1 = arith.constant 0 : i32
    return %c0_i32, %c0_i32_0 : i32, i32
  }
  func.func @transform_3(%arg0: i32, %arg1: i32) -> (i32, i32, i32) {
    %c0_i32 = arith.constant 0 : i32
    %c0_i32_0 = arith.constant 0 : i32
    %c0_i32_1 = arith.constant 0 : i32
    return %arg0, %c0_i32, %c0_i32_0 : i32, i32, i32
  }
}

module attributes {stable_mosaic.version = 11 : i64} {
  func.func @_relu_pool_kernel(%arg0: i32, %arg1: i32, %arg2: memref<1x32x256xf32, #tpu.memory_space<vmem>>, %arg3: memref<1x32x1xf32, #tpu.memory_space<vmem>>, %arg4: memref<32x1xf32, #tpu.memory_space<vmem>>) attributes {dimension_semantics = [#tpu.dimension_semantics<parallel>, #tpu.dimension_semantics<arbitrary>], iteration_bounds = array<i64: 2, 1>, scalar_prefetch = 0 : i64, scratch_operands = 1 : i64, tpu.core_type = #tpu.core_type<tc>, window_params = [{transform_indices = @transform_0, window_bounds = array<i64: 1, 32, 256>}, {transform_indices = @transform_1, window_bounds = array<i64: 1, 32, 1>}]} {
    %c0_i32 = arith.constant 0 : i32
    %0 = arith.cmpi eq, %arg1, %c0_i32 : i32
    %1 = arith.extui %0 : i1 to i32
    %c0_i32_0 = arith.constant 0 : i32
    %2 = arith.cmpi ne, %1, %c0_i32_0 : i32
    scf.if %2 {
      %cst_10 = arith.constant 0.000000e+00 : f32
      %15 = vector.broadcast %cst_10 : f32 to vector<32x1xf32>
      %c0_11 = arith.constant 0 : index
      %c0_12 = arith.constant 0 : index
      %16 = vector.load %arg4[%c0_11, %c0_12] : memref<32x1xf32, #tpu.memory_space<vmem>>, vector<32x1xf32>
      tpu.vector_store %arg4[%c0_11, %c0_12], %15 {strides = array<i32>} : memref<32x1xf32, #tpu.memory_space<vmem>>, vector<32x1xf32>,
    } else {
    }
    %c0 = arith.constant 0 : index
    %c0_1 = arith.constant 0 : index
    %c0_2 = arith.constant 0 : index
    %3 = vector.load %arg2[%c0, %c0_1, %c0_2] : memref<1x32x256xf32, #tpu.memory_space<vmem>>, vector<1x32x256xf32>
    %4 = vector.shape_cast %3 : vector<1x32x256xf32> to vector<32x256xf32>
    %cst = arith.constant 0.000000e+00 : f32
    %5 = vector.broadcast %cst : f32 to vector<32x256xf32>
    %6 = arith.maximumf %4, %5 : vector<32x256xf32>
    %c0_3 = arith.constant 0 : index
    %c0_4 = arith.constant 0 : index
    %7 = vector.load %arg4[%c0_3, %c0_4] : memref<32x1xf32, #tpu.memory_space<vmem>>, vector<32x1xf32>
    %cst_5 = arith.constant dense<0.000000e+00> : vector<32xf32>
    %8 = vector.multi_reduction <add>, %6, %cst_5 [1] : vector<32x256xf32> to vector<32xf32>
    %9 = vector.shape_cast %8 : vector<32xf32> to vector<32x1xf32>
    %10 = arith.addf %7, %9 : vector<32x1xf32>
    %c0_6 = arith.constant 0 : index
    %c0_7 = arith.constant 0 : index
    %11 = vector.load %arg4[%c0_6, %c0_7] : memref<32x1xf32, #tpu.memory_space<vmem>>, vector<32x1xf32>
    tpu.vector_store %arg4[%c0_6, %c0_7], %10 {strides = array<i32>} : memref<32x1xf32, #tpu.memory_space<vmem>>, vector<32x1xf32>,
    %c0_i32_8 = arith.constant 0 : i32
    %12 = arith.cmpi eq, %arg1, %c0_i32_8 : i32
    %13 = arith.extui %12 : i1 to i32
    %c0_i32_9 = arith.constant 0 : i32
    %14 = arith.cmpi ne, %13, %c0_i32_9 : i32
    scf.if %14 {
      %c0_10 = arith.constant 0 : index
      %c0_11 = arith.constant 0 : index
      %15 = vector.load %arg4[%c0_10, %c0_11] : memref<32x1xf32, #tpu.memory_space<vmem>>, vector<32x1xf32>
      %cst_12 = arith.constant 3.906250e-03 : f32
      %16 = vector.broadcast %cst_12 : f32 to vector<32x1xf32>
      %17 = arith.mulf %15, %16 : vector<32x1xf32>
      %c0_13 = arith.constant 0 : index
      %c0_14 = arith.constant 0 : index
      %c0_15 = arith.constant 0 : index
      %18 = vector.load %arg3[%c0_13, %c0_14, %c0_15] : memref<1x32x1xf32, #tpu.memory_space<vmem>>, vector<1x32x1xf32>
      %19 = vector.shape_cast %18 : vector<1x32x1xf32> to vector<32x1xf32>
      %20 = vector.shape_cast %17 : vector<32x1xf32> to vector<1x32x1xf32>
      tpu.vector_store %arg3[%c0_13, %c0_14, %c0_15], %20 {strides = array<i32>} : memref<1x32x1xf32, #tpu.memory_space<vmem>>, vector<1x32x1xf32>,
    } else {
    }
    return
  }
  func.func @transform_0(%arg0: i32, %arg1: i32) -> (i32, i32, i32) {
    %c0_i32 = arith.constant 0 : i32
    %c0_i32_0 = arith.constant 0 : i32
    return %arg0, %c0_i32, %arg1 : i32, i32, i32
  }
  func.func @transform_1(%arg0: i32, %arg1: i32) -> (i32, i32, i32) {
    %c0_i32 = arith.constant 0 : i32
    %c0_i32_0 = arith.constant 0 : i32
    %c0_i32_1 = arith.constant 0 : i32
    return %arg0, %c0_i32, %c0_i32_0 : i32, i32, i32
  }
}

module attributes {stable_mosaic.version = 11 : i64} {
  func.func @_gru4_kernel(%arg0: i32, %arg1: memref<1x2x32xf32, #tpu.memory_space<vmem>>, %arg2: memref<2x32xf32, #tpu.memory_space<vmem>>, %arg3: memref<1x32x96xbf16, #tpu.memory_space<vmem>>, %arg4: memref<1x1x96xf32, #tpu.memory_space<vmem>>, %arg5: memref<1x32x64xbf16, #tpu.memory_space<vmem>>, %arg6: memref<1x1x64xf32, #tpu.memory_space<vmem>>, %arg7: memref<1x32x32xbf16, #tpu.memory_space<vmem>>, %arg8: memref<1x1x32xf32, #tpu.memory_space<vmem>>, %arg9: memref<1x32x10xbf16, #tpu.memory_space<vmem>>, %arg10: memref<1x1x10xf32, #tpu.memory_space<vmem>>, %arg11: memref<1x2x10xf32, #tpu.memory_space<vmem>>, %arg12: memref<2x32xf32, #tpu.memory_space<vmem>>) attributes {dimension_semantics = [#tpu.dimension_semantics<arbitrary>], iteration_bounds = array<i64: 4>, scalar_prefetch = 0 : i64, scratch_operands = 1 : i64, tpu.core_type = #tpu.core_type<tc>, window_params = [{transform_indices = @transform_0, window_bounds = array<i64: 1, 2, 32>}, {pipeline_mode = #tpu.pipeline_mode<synchronous>, transform_indices = @transform_1, window_bounds = array<i64: 2, 32>}, {transform_indices = @transform_2, window_bounds = array<i64: 1, 32, 96>}, {transform_indices = @transform_3, window_bounds = array<i64: 1, 1, 96>}, {transform_indices = @transform_4, window_bounds = array<i64: 1, 32, 64>}, {transform_indices = @transform_5, window_bounds = array<i64: 1, 1, 64>}, {transform_indices = @transform_6, window_bounds = array<i64: 1, 32, 32>}, {transform_indices = @transform_7, window_bounds = array<i64: 1, 1, 32>}, {transform_indices = @transform_8, window_bounds = array<i64: 1, 32, 10>}, {transform_indices = @transform_9, window_bounds = array<i64: 1, 1, 10>}, {transform_indices = @transform_10, window_bounds = array<i64: 1, 2, 10>}]} {
    %c0_i32 = arith.constant 0 : i32
    %0 = arith.cmpi eq, %arg0, %c0_i32 : i32
    %1 = arith.extui %0 : i1 to i32
    %c0_i32_0 = arith.constant 0 : i32
    %2 = arith.cmpi ne, %1, %c0_i32_0 : i32
    scf.if %2 {
      %c0_42 = arith.constant 0 : index
      %c0_43 = arith.constant 0 : index
      %69 = vector.load %arg2[%c0_42, %c0_43] : memref<2x32xf32, #tpu.memory_space<vmem>>, vector<2x32xf32>
      %c0_44 = arith.constant 0 : index
      %c0_45 = arith.constant 0 : index
      %70 = vector.load %arg12[%c0_44, %c0_45] : memref<2x32xf32, #tpu.memory_space<vmem>>, vector<2x32xf32>
      tpu.vector_store %arg12[%c0_44, %c0_45], %69 {strides = array<i32>} : memref<2x32xf32, #tpu.memory_space<vmem>>, vector<2x32xf32>,
    } else {
    }
    %c0 = arith.constant 0 : index
    %c0_1 = arith.constant 0 : index
    %c0_2 = arith.constant 0 : index
    %3 = vector.load %arg1[%c0, %c0_1, %c0_2] : memref<1x2x32xf32, #tpu.memory_space<vmem>>, vector<1x2x32xf32>
    %4 = vector.shape_cast %3 : vector<1x2x32xf32> to vector<2x32xf32>
    %c0_3 = arith.constant 0 : index
    %c0_4 = arith.constant 0 : index
    %5 = vector.load %arg12[%c0_3, %c0_4] : memref<2x32xf32, #tpu.memory_space<vmem>>, vector<2x32xf32>
    %c0_5 = arith.constant 0 : index
    %c0_6 = arith.constant 0 : index
    %c0_7 = arith.constant 0 : index
    %6 = vector.load %arg3[%c0_5, %c0_6, %c0_7] : memref<1x32x96xbf16, #tpu.memory_space<vmem>>, vector<1x32x96xbf16>
    %7 = vector.shape_cast %6 : vector<1x32x96xbf16> to vector<32x96xbf16>
    %8 = arith.extf %7 : vector<32x96xbf16> to vector<32x96xf32>
    %cst = arith.constant dense<0.000000e+00> : vector<2x96xf32>
    %9 = tpu.matmul %4, %8, %cst {dimension_numbers = #tpu.dot_dimension_numbers<[1], [0], [0], [1], [0, 0, 1, 1], [], []>} : vector<2x32xf32>, vector<32x96xf32>, vector<2x96xf32> -> vector<2x96xf32>
    %c0_8 = arith.constant 0 : index
    %c0_9 = arith.constant 0 : index
    %c0_10 = arith.constant 0 : index
    %10 = vector.load %arg4[%c0_8, %c0_9, %c0_10] : memref<1x1x96xf32, #tpu.memory_space<vmem>>, vector<1x1x96xf32>
    %11 = vector.shape_cast %10 : vector<1x1x96xf32> to vector<1x96xf32>
    %12 = vector.broadcast %11 : vector<1x96xf32> to vector<2x96xf32>
    %13 = arith.addf %9, %12 : vector<2x96xf32>
    %c0_11 = arith.constant 0 : index
    %c0_12 = arith.constant 0 : index
    %c0_13 = arith.constant 0 : index
    %14 = vector.load %arg5[%c0_11, %c0_12, %c0_13] : memref<1x32x64xbf16, #tpu.memory_space<vmem>>, vector<1x32x64xbf16>
    %15 = vector.shape_cast %14 : vector<1x32x64xbf16> to vector<32x64xbf16>
    %16 = arith.extf %15 : vector<32x64xbf16> to vector<32x64xf32>
    %cst_14 = arith.constant dense<0.000000e+00> : vector<2x64xf32>
    %17 = tpu.matmul %5, %16, %cst_14 {dimension_numbers = #tpu.dot_dimension_numbers<[1], [0], [0], [1], [0, 0, 1, 1], [], []>} : vector<2x32xf32>, vector<32x64xf32>, vector<2x64xf32> -> vector<2x64xf32>
    %c0_15 = arith.constant 0 : index
    %c0_16 = arith.constant 0 : index
    %c0_17 = arith.constant 0 : index
    %18 = vector.load %arg6[%c0_15, %c0_16, %c0_17] : memref<1x1x64xf32, #tpu.memory_space<vmem>>, vector<1x1x64xf32>
    %19 = vector.shape_cast %18 : vector<1x1x64xf32> to vector<1x64xf32>
    %20 = vector.broadcast %19 : vector<1x64xf32> to vector<2x64xf32>
    %21 = arith.addf %17, %20 : vector<2x64xf32>
    %22 = vector.extract_strided_slice %13 {offsets = [0, 0], sizes = [2, 32], strides = [1, 1]} : vector<2x96xf32> to vector<2x32xf32>
    %23 = vector.extract_strided_slice %21 {offsets = [0, 0], sizes = [2, 32], strides = [1, 1]} : vector<2x64xf32> to vector<2x32xf32>
    %24 = arith.addf %22, %23 : vector<2x32xf32>
    %cst_18 = arith.constant 0.000000e+00 : f32
    %25 = vector.broadcast %cst_18 : f32 to vector<2x32xf32>
    %26 = arith.subf %25, %24 : vector<2x32xf32>
    %27 = math.exp %26 : vector<2x32xf32>
    %cst_19 = arith.constant 1.000000e+00 : f32
    %28 = vector.broadcast %cst_19 : f32 to vector<2x32xf32>
    %29 = arith.addf %28, %27 : vector<2x32xf32>
    %30 = tpu.reciprocal %29 {approx = true} : vector<2x32xf32> -> vector<2x32xf32>
    %31 = vector.extract_strided_slice %13 {offsets = [0, 32], sizes = [2, 32], strides = [1, 1]} : vector<2x96xf32> to vector<2x32xf32>
    %32 = vector.extract_strided_slice %21 {offsets = [0, 32], sizes = [2, 32], strides = [1, 1]} : vector<2x64xf32> to vector<2x32xf32>
    %33 = arith.addf %31, %32 : vector<2x32xf32>
    %cst_20 = arith.constant 0.000000e+00 : f32
    %34 = vector.broadcast %cst_20 : f32 to vector<2x32xf32>
    %35 = arith.subf %34, %33 : vector<2x32xf32>
    %36 = math.exp %35 : vector<2x32xf32>
    %cst_21 = arith.constant 1.000000e+00 : f32
    %37 = vector.broadcast %cst_21 : f32 to vector<2x32xf32>
    %38 = arith.addf %37, %36 : vector<2x32xf32>
    %39 = tpu.reciprocal %38 {approx = true} : vector<2x32xf32> -> vector<2x32xf32>
    %40 = vector.extract_strided_slice %13 {offsets = [0, 64], sizes = [2, 32], strides = [1, 1]} : vector<2x96xf32> to vector<2x32xf32>
    %41 = arith.mulf %39, %5 : vector<2x32xf32>
    %c0_22 = arith.constant 0 : index
    %c0_23 = arith.constant 0 : index
    %c0_24 = arith.constant 0 : index
    %42 = vector.load %arg7[%c0_22, %c0_23, %c0_24] : memref<1x32x32xbf16, #tpu.memory_space<vmem>>, vector<1x32x32xbf16>
    %43 = vector.shape_cast %42 : vector<1x32x32xbf16> to vector<32x32xbf16>
    %44 = arith.extf %43 : vector<32x32xbf16> to vector<32x32xf32>
    %cst_25 = arith.constant dense<0.000000e+00> : vector<2x32xf32>
    %45 = tpu.matmul %41, %44, %cst_25 {dimension_numbers = #tpu.dot_dimension_numbers<[1], [0], [0], [1], [0, 0, 1, 1], [], []>} : vector<2x32xf32>, vector<32x32xf32>, vector<2x32xf32> -> vector<2x32xf32>
    %46 = arith.addf %40, %45 : vector<2x32xf32>
    %c0_26 = arith.constant 0 : index
    %c0_27 = arith.constant 0 : index
    %c0_28 = arith.constant 0 : index
    %47 = vector.load %arg8[%c0_26, %c0_27, %c0_28] : memref<1x1x32xf32, #tpu.memory_space<vmem>>, vector<1x1x32xf32>
    %48 = vector.shape_cast %47 : vector<1x1x32xf32> to vector<1x32xf32>
    %49 = vector.broadcast %48 : vector<1x32xf32> to vector<2x32xf32>
    %50 = arith.addf %46, %49 : vector<2x32xf32>
    %51 = math.tanh %50 : vector<2x32xf32>
    %cst_29 = arith.constant 1.000000e+00 : f32
    %52 = vector.broadcast %cst_29 : f32 to vector<2x32xf32>
    %53 = arith.subf %52, %30 : vector<2x32xf32>
    %54 = arith.mulf %53, %5 : vector<2x32xf32>
    %55 = arith.mulf %30, %51 : vector<2x32xf32>
    %56 = arith.addf %54, %55 : vector<2x32xf32>
    %c0_30 = arith.constant 0 : index
    %c0_31 = arith.constant 0 : index
    %c0_32 = arith.constant 0 : index
    %57 = vector.load %arg9[%c0_30, %c0_31, %c0_32] : memref<1x32x10xbf16, #tpu.memory_space<vmem>>, vector<1x32x10xbf16>
    %58 = vector.shape_cast %57 : vector<1x32x10xbf16> to vector<32x10xbf16>
    %59 = arith.extf %58 : vector<32x10xbf16> to vector<32x10xf32>
    %cst_33 = arith.constant dense<0.000000e+00> : vector<2x10xf32>
    %60 = tpu.matmul %56, %59, %cst_33 {dimension_numbers = #tpu.dot_dimension_numbers<[1], [0], [0], [1], [0, 0, 1, 1], [], []>} : vector<2x32xf32>, vector<32x10xf32>, vector<2x10xf32> -> vector<2x10xf32>
    %c0_34 = arith.constant 0 : index
    %c0_35 = arith.constant 0 : index
    %c0_36 = arith.constant 0 : index
    %61 = vector.load %arg10[%c0_34, %c0_35, %c0_36] : memref<1x1x10xf32, #tpu.memory_space<vmem>>, vector<1x1x10xf32>
    %62 = vector.shape_cast %61 : vector<1x1x10xf32> to vector<1x10xf32>
    %63 = vector.broadcast %62 : vector<1x10xf32> to vector<2x10xf32>
    %64 = arith.addf %60, %63 : vector<2x10xf32>
    %c0_37 = arith.constant 0 : index
    %c0_38 = arith.constant 0 : index
    %c0_39 = arith.constant 0 : index
    %65 = vector.load %arg11[%c0_37, %c0_38, %c0_39] : memref<1x2x10xf32, #tpu.memory_space<vmem>>, vector<1x2x10xf32>
    %66 = vector.shape_cast %65 : vector<1x2x10xf32> to vector<2x10xf32>
    %67 = vector.shape_cast %64 : vector<2x10xf32> to vector<1x2x10xf32>
    tpu.vector_store %arg11[%c0_37, %c0_38, %c0_39], %67 {strides = array<i32>} : memref<1x2x10xf32, #tpu.memory_space<vmem>>, vector<1x2x10xf32>,
    %c0_40 = arith.constant 0 : index
    %c0_41 = arith.constant 0 : index
    %68 = vector.load %arg12[%c0_40, %c0_41] : memref<2x32xf32, #tpu.memory_space<vmem>>, vector<2x32xf32>
    tpu.vector_store %arg12[%c0_40, %c0_41], %56 {strides = array<i32>} : memref<2x32xf32, #tpu.memory_space<vmem>>, vector<2x32xf32>,
    return
  }
  func.func @transform_0(%arg0: i32) -> (i32, i32, i32) {
    %c0_i32 = arith.constant 0 : i32
    %c0_i32_0 = arith.constant 0 : i32
    %c0_i32_1 = arith.constant 0 : i32
    return %arg0, %c0_i32, %c0_i32_0 : i32, i32, i32
  }
  func.func @transform_1(%arg0: i32) -> (i32, i32) {
    %c0_i32 = arith.constant 0 : i32
    %c0_i32_0 = arith.constant 0 : i32
    %c0_i32_1 = arith.constant 0 : i32
    return %c0_i32, %c0_i32_0 : i32, i32
  }
  func.func @transform_2(%arg0: i32) -> (i32, i32, i32) {
    %c0_i32 = arith.constant 0 : i32
    %c0_i32_0 = arith.constant 0 : i32
    %c0_i32_1 = arith.constant 0 : i32
    return %arg0, %c0_i32, %c0_i32_0 : i32, i32, i32
  }
  func.func @transform_3(%arg0: i32) -> (i32, i32, i32) {
    %c0_i32 = arith.constant 0 : i32
    %c0_i32_0 = arith.constant 0 : i32
    %c0_i32_1 = arith.constant 0 : i32
    return %arg0, %c0_i32, %c0_i32_0 : i32, i32, i32
  }
  func.func @transform_4(%arg0: i32) -> (i32, i32, i32) {
    %c0_i32 = arith.constant 0 : i32
    %c0_i32_0 = arith.constant 0 : i32
    %c0_i32_1 = arith.constant 0 : i32
    return %arg0, %c0_i32, %c0_i32_0 : i32, i32, i32
  }
  func.func @transform_5(%arg0: i32) -> (i32, i32, i32) {
    %c0_i32 = arith.constant 0 : i32
    %c0_i32_0 = arith.constant 0 : i32
    %c0_i32_1 = arith.constant 0 : i32
    return %arg0, %c0_i32, %c0_i32_0 : i32, i32, i32
  }
  func.func @transform_6(%arg0: i32) -> (i32, i32, i32) {
    %c0_i32 = arith.constant 0 : i32
    %c0_i32_0 = arith.constant 0 : i32
    %c0_i32_1 = arith.constant 0 : i32
    return %arg0, %c0_i32, %c0_i32_0 : i32, i32, i32
  }
  func.func @transform_7(%arg0: i32) -> (i32, i32, i32) {
    %c0_i32 = arith.constant 0 : i32
    %c0_i32_0 = arith.constant 0 : i32
    %c0_i32_1 = arith.constant 0 : i32
    return %arg0, %c0_i32, %c0_i32_0 : i32, i32, i32
  }
  func.func @transform_8(%arg0: i32) -> (i32, i32, i32) {
    %c0_i32 = arith.constant 0 : i32
    %c0_i32_0 = arith.constant 0 : i32
    %c0_i32_1 = arith.constant 0 : i32
    return %arg0, %c0_i32, %c0_i32_0 : i32, i32, i32
  }
  func.func @transform_9(%arg0: i32) -> (i32, i32, i32) {
    %c0_i32 = arith.constant 0 : i32
    %c0_i32_0 = arith.constant 0 : i32
    %c0_i32_1 = arith.constant 0 : i32
    return %arg0, %c0_i32, %c0_i32_0 : i32, i32, i32
  }
  func.func @transform_10(%arg0: i32) -> (i32, i32, i32) {
    %c0_i32 = arith.constant 0 : i32
    %c0_i32_0 = arith.constant 0 : i32
    %c0_i32_1 = arith.constant 0 : i32
    return %arg0, %c0_i32, %c0_i32_0 : i32, i32, i32
  }
}

</mosaic_0001>

<bundles_post_ra>
// kernel: mrgblock_res_forward.8
= control target key start
LH: loop header
LB: loop body
LE: loop exit
PB: predicated region body
PF: predicated region fallthrough
CT: control target
= control target key end

     0   :  { %s566_s12 = smov 0   ;;  %s568_s13 = smov 0   ;;  %s639_s0 = inlined_call_operand.vmem [shape: f32[2,32,256], index: 0, kind: input, shape index: {}]   ;;  %s640_s1 = inlined_call_operand.vmem [shape: f32[32,32], index: 1, kind: input, shape index: {}]   ;;  %s641_s2 = inlined_call_operand.vmem [shape: f32[32,1], index: 2, kind: input, shape index: {}]   ;;  %s642_s3 = inlined_call_operand.vmem [shape: f32[2,32,1], index: 3, kind: output, shape index: {}]  }
   0x1   :  { %s570_s14 = smov 0  }
   0x2 LB: > { %s25_s15 = sadd.s32 1, %s538_s13  ;;  %p467_p0 = scmp.ge.s32.totalorder %s542_s14, 1  ;;  %s542_s14 = sphi %s570_s14, %s13_s14   ;;  %s538_s13 = sphi %s568_s13, %s644_s13   ;;  %s534_s12 = sphi %s566_s12, %s643_s12  }
   0x3   : > { %p27_p1 = scmp.ge.s32.totalorder %s25_s15, 2  ;;  %p156_p2 = scmp.lt.s32.totalorder %s542_s14, 3 }
   0x5   : > { %s646_s15 = smov (%p27_p1, %s25_s15), 0  ;;  %p157_p3 = pnand %p467_p0, %p156_p2 }
   0x6   : > { %p185_p4 = scmp.lt.s32.totalorder (!%p157_p3), %s534_s12, 1  ;;  %v544_v0 = vmov (!%p157_p3), 0.0   ;;  %v220_v1 = vld [vmem:[%s641_s2] sm:$0xff] (!%p157_p3)  ;;  %v222_v2 = vld [vmem:[%s641_s2 + $0x10] sm:$0xff] (!%p157_p3)  ;;  %v545_v3 = vmov (!%p157_p3), 0   ;;  %v221_v4 = vld [vmem:[%s641_s2 + $0x8] sm:$0xff] (!%p157_p3) }
   0x7   : > { %160 = sbr.rel (%p157_p3) target bundleno = 410 (0x19a), region = 32  ;;  %321 = vmatprep.mubr.f32.mxu0 (!%p157_p3), %v544_v0  ;;  %333 = vmatprep.mubr.f32.mxu1 (!%p157_p3), %v544_v0  ;;  %v223_v5 = vld [vmem:[%s641_s2 + $0x18] sm:$0xff] (!%p157_p3)  ;;  %v216_v18 = vld [vmem:[%s640_s1] sm:$0xff] (!%p157_p3)  ;;  %vm244_vm0 = vcmask (!%p157_p3), 261120   ;;  %v218_v19 = vld [vmem:[%s640_s1 + $0x10] sm:$0xff] (!%p157_p3)  ;;  %vm203_vm1 = vcmask (!%p157_p3), 7168  }
   0x8   : > { %518 = vset.pattern.permute.xlu0 (!%p157_p3), %v545_v3  ;;  %519 = vset.pattern.permute.xlu1 (!%p157_p3), %v545_v3  ;;  %v217_v20 = vld [vmem:[%s640_s1 + $0x8] sm:$0xff] (!%p157_p3)  ;;  %v219_v21 = vld [vmem:[%s640_s1 + $0x18] sm:$0xff] (!%p157_p3)  ;;  %204 = vst.msk [vmem:[#allocation2] sm:$0xff] (!%p157_p3), %vm203_vm1, %v544_v0  ;;  %205 = vst.msk [vmem:[#allocation2 + $0x8] sm:$0xff] (!%p157_p3), %vm203_vm1, %v544_v0 }
   0x9   : > { %226 = vperm.xlu0 (!%p157_p3), %518, %v220_v1   ;;  %236 = vperm.xlu1 (!%p157_p3), %519, %v222_v2   ;;  %206 = vst.msk [vmem:[#allocation2 + $0x10] sm:$0xff] (!%p157_p3), %vm203_vm1, %v544_v0  ;;  %207 = vst.msk [vmem:[#allocation2 + $0x18] sm:$0xff] (!%p157_p3), %vm203_vm1, %v544_v0 }
   0xd   : > { %231 = vperm.xlu0 (!%p157_p3), %518, %v221_v4   ;;  %241 = vperm.xlu1 (!%p157_p3), %519, %v223_v5  }
   0xe   : > { %s648_s12 = smov (!%p185_p4, %s534_s12), 1 }
   0xf   : > { %s478_s20 = sshll.u32 %s648_s12, 6  ;;  %v354_v54 = vld [vmem:[#allocation2] sm:$0xff]  ;;  %v355_v57 = vld [vmem:[#allocation2 + $0x8] sm:$0xff]  ;;  %s479_s9 = sshll.u32 %s648_s12, 5 }
  0x10   : > { %s192_s27 = scalar_lea.vmem %s639_s0, %s478_s20  ;;  %v356_v58 = vld [vmem:[#allocation2 + $0x10] sm:$0xff]  ;;  %v357_v63 = vld [vmem:[#allocation2 + $0x18] sm:$0xff]  ;;  %s198_s16 = scalar_lea.vmem %s642_s3, %s479_s9 }
  0x11   : > { %v209_v6 = vld [vmem:[%s192_s27 + $0x8] sm:$0xff]  ;;  %v211_v7 = vld [vmem:[%s192_s27 + $0x18] sm:$0xff]  ;;  %v208_v8 = vld [vmem:[%s192_s27] sm:$0xff] }
  0x12   : > { %v480_v9 = vpack.c.bf16 %v211_v7, %v209_v6  ;;  %v210_v10 = vld [vmem:[%s192_s27 + $0x10] sm:$0xff]  ;;  %v213_v11 = vld [vmem:[%s192_s27 + $0x28] sm:$0xff]  ;;  %v215_v12 = vld [vmem:[%s192_s27 + $0x38] sm:$0xff] }
  0x13   : > { %v482_v13 = vpack.c.bf16 %v210_v10, %v208_v8  ;;  %v484_v14 = vpack.c.bf16 %v215_v12, %v213_v11  ;;  %v212_v15 = vld [vmem:[%s192_s27 + $0x20] sm:$0xff]  ;;  %v214_v16 = vld [vmem:[%s192_s27 + $0x30] sm:$0xff] }
  0x14   : > { %481 = vmatprep.subr.bf16.mxu0 %v480_v9  ;;  %488 = vmatprep.subr.bf16.mxu1 %v480_v9  ;;  %v486_v17 = vpack.c.bf16 %v214_v16, %v212_v15 }
  0x15   : > { %483 = vmatpush1.bf16.msra.mxu0 %v482_v13  ;;  %490 = vmatpush1.bf16.msra.mxu1 %v482_v13 }
  0x16   : > { %485 = vmatprep.subr.bf16.mxu0 %v484_v14  ;;  %489 = vmatprep.subr.bf16.mxu1 %v484_v14 }
  0x19   : > { %487 = vmatpush1.bf16.msra.mxu0 %v486_v17  ;;  %491 = vmatpush1.bf16.msra.mxu1 %v486_v17 }
  0x1c   : > { %472 = vmatmul.mubr.msk.f32.vlgmr.msra.gmra.mrb[0].mxu0 %vm244_vm0, %v216_v18  ;;  %474 = vmatmul.mubr.msk.f32.vlgmr.msra.gmra.mrb[0].mxu1 %vm244_vm0, %v218_v19 }
  0x1d   : > { %327 = vmatprep.mubr.f32.mxu0 %v544_v0  ;;  %339 = vmatprep.mubr.f32.mxu1 %v544_v0 }
  0x20   : > { %473 = vmatmul.mubr.msk.f32.gmra.mrb[2].mxu0 %vm244_vm0, %v217_v20  ;;  %475 = vmatmul.mubr.msk.f32.gmra.mrb[2].mxu1 %vm244_vm0, %v219_v21 }
  0x88   : > { %v237_v22 = vpop.permute.xlu1 %236  ;;  %v227_v23 = vpop.permute.xlu0 %226 }
  0x8c   : > { %v242_v32 = vpop.permute.xlu1 %241  ;;  %v232_v34 = vpop.permute.xlu0 %231 }
  0xef   : > { %v323_v24 = vpop.f32.mrb[0].mxu0  ;;  %v335_v25 = vpop.f32.mrb[0].mxu1 }
  0xf0   : > { %v324_v26 = vadd.f32 %v323_v24, %v227_v23  ;;  %v325_v27 = vpop.f32.mrb[1].mxu0  ;;  %v336_v28 = vadd.f32 %v335_v25, %v237_v22  ;;  %v337_v29 = vpop.f32.mrb[1].mxu1 }
  0xf1   : > { %v326_v30 = vadd.f32 %v325_v27, %v227_v23  ;;  %v338_v31 = vadd.f32 %v337_v29, %v237_v22 }
  0xf2   : > { %v346_v33 = vmax.f32 %v324_v26, 0.0  ;;  %v350_v35 = vmax.f32 %v336_v28, 0.0 }
  0xf3   : > { %v347_v36 = vmax.f32 %v326_v30, 0.0  ;;  %v351_v37 = vmax.f32 %v338_v31, 0.0  ;;  %v329_v38 = vpop.f32.mrb[2].mxu0  ;;  %v341_v39 = vpop.f32.mrb[2].mxu1 }
  0xf4   : > { %v330_v40 = vadd.f32 %v329_v38, %v232_v34  ;;  %v342_v41 = vadd.f32 %v341_v39, %v242_v32  ;;  %v331_v42 = vpop.f32.mrb[3].mxu0  ;;  %v343_v43 = vpop.f32.mrb[3].mxu1 }
  0xf5   : > { %v332_v44 = vadd.f32 %v331_v42, %v232_v34  ;;  %v344_v45 = vadd.f32 %v343_v43, %v242_v32  ;;  %v358_v46 = vadd.f32 %v347_v36, %v346_v33  ;;  %v364_v47 = vadd.f32 %v351_v37, %v350_v35 }
  0xf6   : > { %v348_v48 = vmax.f32 %v330_v40, 0.0  ;;  %v352_v49 = vmax.f32 %v342_v41, 0.0 }
  0xf7   : > { %v349_v50 = vmax.f32 %v332_v44, 0.0  ;;  %v353_v51 = vmax.f32 %v344_v45, 0.0  ;;  %359 = vadd.xlane.f32.xlu0 %v358_v46 }
  0xf9   : > { %v361_v52 = vadd.f32 %v349_v50, %v348_v48  ;;  %v367_v53 = vadd.f32 %v353_v51, %v352_v49 }
  0xfb   : > { %362 = vadd.xlane.f32.xlu1 %v361_v52  ;;  %365 = vadd.xlane.f32.xlu0 %v364_v47 }
  0xff   : > { %368 = vadd.xlane.f32.xlu0 %v367_v53 }
 0x184   : > { %v360_v55 = vpop.xlane.xlu0 %359 }
 0x185   : > { %v370_v56 = vadd.f32 %v360_v55, %v354_v54 }
 0x187   : > { %375 = vst.msk [vmem:[#allocation2] sm:$0xff] %vm203_vm1, %v370_v56 }
 0x188   : > { %v363_v59 = vpop.xlane.xlu1 %362  ;;  %v366_v60 = vpop.xlane.xlu0 %365 }
 0x189   : > { %v371_v61 = vadd.f32 %v363_v59, %v355_v57  ;;  %v372_v62 = vadd.f32 %v366_v60, %v356_v58 }
 0x18b   : > { %376 = vst.msk [vmem:[#allocation2 + $0x8] sm:$0xff] %vm203_vm1, %v371_v61  ;;  %377 = vst.msk [vmem:[#allocation2 + $0x10] sm:$0xff] %vm203_vm1, %v372_v62 }
 0x18c   : > { %v369_v0 = vpop.xlane.xlu0 %368 }
 0x18d   : > { %v373_v1 = vadd.f32 %v369_v0, %v357_v63 }
 0x18e   : > { %v382_v2 = vld [vmem:[#allocation2] sm:$0xff] }
 0x18f   : > { %v386_v3 = vmul.f32 0.00390625, %v382_v2  ;;  %378 = vst.msk [vmem:[#allocation2 + $0x18] sm:$0xff] %vm203_vm1, %v373_v1 }
 0x191   : > { %390 = vst.msk [vmem:[%s198_s16] sm:$0xff] %vm203_vm1, %v386_v3 }
 0x192   : > { %v383_v4 = vld [vmem:[#allocation2 + $0x8] sm:$0xff]  ;;  %v384_v5 = vld [vmem:[#allocation2 + $0x10] sm:$0xff] }
 0x193   : > { %v387_v6 = vmul.f32 0.00390625, %v383_v4  ;;  %v388_v7 = vmul.f32 0.00390625, %v384_v5 }
 0x195   : > { %391 = vst.msk [vmem:[%s198_s16 + $0x8] sm:$0xff] %vm203_vm1, %v387_v6  ;;  %392 = vst.msk [vmem:[%s198_s16 + $0x10] sm:$0xff] %vm203_vm1, %v388_v7 }
 0x196   : > { %v385_v8 = vld [vmem:[#allocation2 + $0x18] sm:$0xff] }
 0x197   : > { %v389_v9 = vmul.f32 0.00390625, %v385_v8 }
 0x199   : > { %393 = vst.msk [vmem:[%s198_s16 + $0x18] sm:$0xff] %vm203_vm1, %v389_v9 }
 0x19a PF: > { %s13_s14 = sadd.s32 1, %s542_s14   ;;  %s643_s12 = smov %s538_s13 }
 0x19b   : > { %p10_p5 = scmp.ge.s32.totalorder %s13_s14, 4   ;;  %s644_s13 = smov %s646_s15 }
 0x19d   :  { %12 = sbr.rel (!%p10_p5) target bundleno = 2 (0x2), region = 70 }

// kernel: mrgblock_res_forward.6
= control target key start
LH: loop header
LB: loop body
LE: loop exit
PB: predicated region body
PF: predicated region fallthrough
CT: control target
= control target key end

     0   :  { %s765_s18 = smov 0   ;;  %s767_s19 = smov 0   ;;  %s869_s0 = inlined_call_operand.vmem [shape: f32[2,4,256], index: 0, kind: input, shape index: {}]   ;;  %s870_s1 = inlined_call_operand.vmem [shape: f32[32,4], index: 1, kind: input, shape index: {}]   ;;  %s871_s2 = inlined_call_operand.vmem [shape: f32[32,1], index: 2, kind: input, shape index: {}]   ;;  %s872_s3 = inlined_call_operand.vmem [shape: f32[32,1], index: 3, kind: input, shape index: {}]   ;;  %s873_s4 = inlined_call_operand.vmem [shape: f32[2,32,256], index: 4, kind: output, shape index: {0}]   ;;  %s874_s5 = inlined_call_operand.vmem [shape: f32[2,32,1], index: 5, kind: output, shape index: {1}]  }
   0x1   :  { %s769_s20 = smov 0  }
   0x2 LB: > { %s28_s21 = sadd.s32 1, %s727_s19  ;;  %p660_p0 = scmp.ge.s32.totalorder %s731_s20, 1  ;;  %s731_s20 = sphi %s769_s20, %s16_s20   ;;  %s727_s19 = sphi %s767_s19, %s876_s19   ;;  %s723_s18 = sphi %s765_s18, %s875_s18  }
   0x3   : > { %p30_p1 = scmp.ge.s32.totalorder %s28_s21, 2  ;;  %p211_p2 = scmp.lt.s32.totalorder %s731_s20, 3 }
   0x5   : > { %s878_s21 = smov (%p30_p1, %s28_s21), 0  ;;  %p212_p3 = pnand %p660_p0, %p211_p2 }
   0x6   : > { %p253_p4 = scmp.lt.s32.totalorder (!%p212_p3), %s723_s18, 1  ;;  %v733_v0 = vmov (!%p212_p3), 0.0   ;;  %v400_v1 = vld [vmem:[%s871_s2] sm:$0xff] (!%p212_p3)  ;;  %v734_v2 = vmov (!%p212_p3), 0   ;;  %v402_v3 = vld [vmem:[%s871_s2 + $0x10] sm:$0xff] (!%p212_p3)  ;;  %v401_v4 = vld [vmem:[%s871_s2 + $0x8] sm:$0xff] (!%p212_p3) }
   0x7   : > { %215 = sbr.rel (%p212_p3) target bundleno = 407 (0x197), region = 36  ;;  %375 = vmatprep.mubr.f32.mxu0 (!%p212_p3), %v733_v0  ;;  %387 = vmatprep.mubr.f32.mxu1 (!%p212_p3), %v733_v0  ;;  %v403_v5 = vld [vmem:[%s871_s2 + $0x18] sm:$0xff] (!%p212_p3)  ;;  %vm306_vm0 = vcmask (!%p212_p3), 1043456   ;;  %v287_v8 = vld [vmem:[%s870_s1] sm:$0xff] (!%p212_p3)  ;;  %vm293_vm1 = vcmask (!%p212_p3), 31744   ;;  %v289_v9 = vld [vmem:[%s870_s1 + $0x10] sm:$0xff] (!%p212_p3) }
   0x8   : > { %706 = vset.pattern.permute.xlu0 (!%p212_p3), %v734_v2  ;;  %707 = vset.pattern.permute.xlu1 (!%p212_p3), %v734_v2  ;;  %v432_v10 = vld [vmem:[%s872_s3] sm:$0xff] (!%p212_p3)  ;;  %v433_v11 = vld [vmem:[%s872_s3 + $0x8] sm:$0xff] (!%p212_p3)  ;;  %v290_v13 = vld [vmem:[%s870_s1 + $0x18] sm:$0xff] (!%p212_p3)  ;;  %vm281_vm2 = vcmask (!%p212_p3), 7168  }
   0x9   : > { %406 = vperm.xlu0 (!%p212_p3), %706, %v400_v1   ;;  %416 = vperm.xlu1 (!%p212_p3), %707, %v402_v3   ;;  %v288_v12 = vld [vmem:[%s870_s1 + $0x8] sm:$0xff] (!%p212_p3)  ;;  %v434_v14 = vld [vmem:[%s872_s3 + $0x10] sm:$0xff] (!%p212_p3)  ;;  %v435_v15 = vld [vmem:[%s872_s3 + $0x18] sm:$0xff] (!%p212_p3)  ;;  %282 = vst.msk [vmem:[#allocation2] sm:$0xff] (!%p212_p3), %vm281_vm2, %v733_v0 }
   0xa   : > { %283 = vst.msk [vmem:[#allocation2 + $0x8] sm:$0xff] (!%p212_p3), %vm281_vm2, %v733_v0  ;;  %284 = vst.msk [vmem:[#allocation2 + $0x10] sm:$0xff] (!%p212_p3), %vm281_vm2, %v733_v0 }
   0xb   : > { %285 = vst.msk [vmem:[#allocation2 + $0x18] sm:$0xff] (!%p212_p3), %vm281_vm2, %v733_v0 }
   0xd   : > { %411 = vperm.xlu0 (!%p212_p3), %706, %v401_v4   ;;  %421 = vperm.xlu1 (!%p212_p3), %707, %v403_v5  }
   0xe   : > { %s880_s18 = smov (!%p253_p4, %s723_s18), 1 }
   0xf   : > { %s675_s26 = sshll.u32 %s880_s18, 3  ;;  %s676_s29 = sshll.u32 %s880_s18, 6 }
  0x10   : > { %s260_s8 = scalar_lea.vmem %s869_s0, %s675_s26  ;;  %s837_s7 = scalar_lea.vmem %s873_s4, %s676_s29  ;;  %v496_v4 = vld [vmem:[#allocation2] sm:$0xff] }
  0x11   : > { %v286_v6 = vld [vmem:[%s260_s8] sm:$0xff]  ;;  %438 = vperm.xlu0 %706, %v432_v10   ;;  %443 = vperm.xlu1 %707, %v433_v11   ;;  %s677_s8 = sshll.u32 %s880_s18, 5 }
  0x12   : > { %v292_v7 = vcombine.high %v286_v6, %v286_v6  ;;  %s276_s11 = scalar_lea.vmem %s874_s5, %s677_s8 }
  0x14   : > { %667 = vmatprep.subr.msk.mxu0 %vm306_vm0, %v292_v7  ;;  %678 = vmatprep.subr.msk.mxu1 %vm306_vm0, %v292_v7  ;;  %v498_v7 = vld [vmem:[#allocation2 + $0x10] sm:$0xff] }
  0x15   : > { %668 = vmatpush1.msk.msra.mxu0 %vm306_vm0, %v286_v6  ;;  %679 = vmatpush1.msk.msra.mxu1 %vm306_vm0, %v286_v6 }
  0x16   : > { %669 = vmatmul.mubr.msk.f32.vlgmr.msra.gmra.mrb[0].mxu0 %vm293_vm1, %v287_v8  ;;  %671 = vmatmul.mubr.msk.f32.vlgmr.msra.gmra.mrb[0].mxu1 %vm293_vm1, %v289_v9  ;;  %v497_v8 = vld [vmem:[#allocation2 + $0x8] sm:$0xff] }
  0x17   : > { %381 = vmatprep.mubr.f32.mxu0 %v733_v0  ;;  %393 = vmatprep.mubr.f32.mxu1 %v733_v0 }
  0x18   : > { %448 = vperm.xlu0 %706, %v434_v14   ;;  %453 = vperm.xlu1 %707, %v435_v15  }
  0x1a   : > { %670 = vmatmul.mubr.msk.f32.gmra.mrb[2].mxu0 %vm293_vm1, %v288_v12  ;;  %672 = vmatmul.mubr.msk.f32.gmra.mrb[2].mxu1 %vm293_vm1, %v290_v13  ;;  %v499_v13 = vld [vmem:[#allocation2 + $0x18] sm:$0xff] }
  0x88   : > { %v407_v16 = vpop.permute.xlu0 %406  ;;  %v417_v17 = vpop.permute.xlu1 %416 }
  0x8c   : > { %v412_v18 = vpop.permute.xlu0 %411  ;;  %v422_v19 = vpop.permute.xlu1 %421 }
  0x90   : > { %v439_v20 = vpop.permute.xlu0 %438  ;;  %v444_v21 = vpop.permute.xlu1 %443 }
  0x97   : > { %v449_v28 = vpop.permute.xlu0 %448  ;;  %v454_v42 = vpop.permute.xlu1 %453 }
  0xe9   : > { %v377_v22 = vpop.f32.mrb[0].mxu0  ;;  %v389_v23 = vpop.f32.mrb[0].mxu1 }
  0xea   : > { %v424_v24 = vmul.f32 %v407_v16, %v377_v22  ;;  %v428_v25 = vmul.f32 %v417_v17, %v389_v23  ;;  %v379_v26 = vpop.f32.mrb[1].mxu0  ;;  %v391_v27 = vpop.f32.mrb[1].mxu1 }
  0xeb   : > { %v425_v29 = vmul.f32 %v407_v16, %v379_v26  ;;  %v429_v30 = vmul.f32 %v417_v17, %v391_v27 }
  0xec   : > { %v456_v31 = vadd.f32 %v439_v20, %v424_v24  ;;  %v460_v32 = vadd.f32 %v449_v28, %v428_v25 }
  0xed   : > { %v457_v33 = vadd.f32 %v439_v20, %v425_v29  ;;  %v461_v34 = vadd.f32 %v449_v28, %v429_v30  ;;  %v383_v35 = vpop.f32.mrb[2].mxu0  ;;  %v395_v36 = vpop.f32.mrb[2].mxu1 }
  0xee   : > { %v426_v37 = vmul.f32 %v412_v18, %v383_v35  ;;  %v430_v38 = vmul.f32 %v422_v19, %v395_v36  ;;  %v385_v39 = vpop.f32.mrb[3].mxu0  ;;  %v397_v40 = vpop.f32.mrb[3].mxu1  ;;  %vm464_vm3 = vcmp.gt.f32.partialorder %v456_v31, 0.0  ;;  %v472_v41 = vmul.f32 0.1, %v456_v31 }
  0xef   : > { %v427_v43 = vmul.f32 %v412_v18, %v385_v39  ;;  %v431_v44 = vmul.f32 %v422_v19, %v397_v40  ;;  %vm465_vm4 = vcmp.gt.f32.partialorder %v457_v33, 0.0  ;;  %v473_v45 = vmul.f32 0.1, %v457_v33 }
  0xf0   : > { %v458_v46 = vadd.f32 %v444_v21, %v426_v37  ;;  %v462_v47 = vadd.f32 %v454_v42, %v430_v38  ;;  %v480_v48 = vsel %vm464_vm3, %v456_v31, %v472_v41  ;;  %vm468_vm5 = vcmp.gt.f32.partialorder %v460_v32, 0.0 }
  0xf1   : > { %v459_v49 = vadd.f32 %v444_v21, %v427_v43  ;;  %v463_v50 = vadd.f32 %v454_v42, %v431_v44  ;;  %v481_v51 = vsel %vm465_vm4, %v457_v33, %v473_v45  ;;  %488 = vst [vmem:[%s837_s7] sm:$0xff] %v480_v48  ;;  %vm469_vm6 = vcmp.gt.f32.partialorder %v461_v34, 0.0 }
  0xf2   : > { %v500_v52 = vadd.f32 %v481_v51, %v480_v48  ;;  %489 = vst [vmem:[%s837_s7 + $0x8] sm:$0xff] %v481_v51  ;;  %v476_v53 = vmul.f32 0.1, %v460_v32  ;;  %v477_v54 = vmul.f32 0.1, %v461_v34  ;;  %vm466_vm7 = vcmp.gt.f32.partialorder %v458_v46, 0.0 }
  0xf3   : > { %vm467_vm8 = vcmp.gt.f32.partialorder %v459_v49, 0.0  ;;  %v474_v55 = vmul.f32 0.1, %v458_v46  ;;  %v475_v56 = vmul.f32 0.1, %v459_v49  ;;  %vm470_vm9 = vcmp.gt.f32.partialorder %v462_v47, 0.0 }
  0xf4   : > { %501 = vadd.xlane.f32.xlu0 %v500_v52  ;;  %v484_v57 = vsel %vm468_vm5, %v460_v32, %v476_v53  ;;  %v485_v58 = vsel %vm469_vm6, %v461_v34, %v477_v54  ;;  %vm471_vm10 = vcmp.gt.f32.partialorder %v463_v50, 0.0  ;;  %v478_v59 = vmul.f32 0.1, %v462_v47 }
  0xf5   : > { %492 = vst [vmem:[%s837_s7 + $0x20] sm:$0xff] %v484_v57  ;;  %493 = vst [vmem:[%s837_s7 + $0x28] sm:$0xff] %v485_v58  ;;  %v506_v60 = vadd.f32 %v485_v58, %v484_v57  ;;  %v482_v61 = vsel %vm466_vm7, %v458_v46, %v474_v55  ;;  %v483_v62 = vsel %vm467_vm8, %v459_v49, %v475_v56  ;;  %v479_v63 = vmul.f32 0.1, %v463_v50 }
  0xf6   : > { %490 = vst [vmem:[%s837_s7 + $0x10] sm:$0xff] %v482_v61  ;;  %v503_v0 = vadd.f32 %v483_v62, %v482_v61  ;;  %491 = vst [vmem:[%s837_s7 + $0x18] sm:$0xff] %v483_v62  ;;  %v486_v1 = vsel %vm470_vm9, %v462_v47, %v478_v59 }
  0xf7   : > { %v487_v2 = vsel %vm471_vm10, %v463_v50, %v479_v63  ;;  %494 = vst [vmem:[%s837_s7 + $0x30] sm:$0xff] %v486_v1 }
  0xf8   : > { %507 = vadd.xlane.f32.xlu0 %v506_v60  ;;  %504 = vadd.xlane.f32.xlu1 %v503_v0  ;;  %495 = vst [vmem:[%s837_s7 + $0x38] sm:$0xff] %v487_v2  ;;  %v509_v3 = vadd.f32 %v487_v2, %v486_v1 }
  0xfc   : > { %510 = vadd.xlane.f32.xlu0 %v509_v3 }
 0x181   : > { %v502_v5 = vpop.xlane.xlu0 %501 }
 0x182   : > { %v512_v6 = vadd.f32 %v502_v5, %v496_v4 }
 0x184   : > { %517 = vst.msk [vmem:[#allocation2] sm:$0xff] %vm281_vm2, %v512_v6 }
 0x185   : > { %v508_v9 = vpop.xlane.xlu0 %507  ;;  %v505_v10 = vpop.xlane.xlu1 %504 }
 0x186   : > { %v514_v11 = vadd.f32 %v508_v9, %v498_v7  ;;  %v513_v12 = vadd.f32 %v505_v10, %v497_v8 }
 0x188   : > { %519 = vst.msk [vmem:[#allocation2 + $0x10] sm:$0xff] %vm281_vm2, %v514_v11  ;;  %518 = vst.msk [vmem:[#allocation2 + $0x8] sm:$0xff] %vm281_vm2, %v513_v12 }
 0x189   : > { %v511_v14 = vpop.xlane.xlu0 %510 }
 0x18a   : > { %v515_v15 = vadd.f32 %v511_v14, %v499_v13 }
 0x18b   : > { %v524_v16 = vld [vmem:[#allocation2] sm:$0xff] }
 0x18c   : > { %v528_v17 = vmul.f32 0.00390625, %v524_v16  ;;  %520 = vst.msk [vmem:[#allocation2 + $0x18] sm:$0xff] %vm281_vm2, %v515_v15 }
 0x18e   : > { %532 = vst.msk [vmem:[%s276_s11] sm:$0xff] %vm281_vm2, %v528_v17 }
 0x18f   : > { %v526_v18 = vld [vmem:[#allocation2 + $0x10] sm:$0xff]  ;;  %v525_v19 = vld [vmem:[#allocation2 + $0x8] sm:$0xff] }
 0x190   : > { %v530_v20 = vmul.f32 0.00390625, %v526_v18  ;;  %v529_v21 = vmul.f32 0.00390625, %v525_v19 }
 0x192   : > { %534 = vst.msk [vmem:[%s276_s11 + $0x10] sm:$0xff] %vm281_vm2, %v530_v20  ;;  %533 = vst.msk [vmem:[%s276_s11 + $0x8] sm:$0xff] %vm281_vm2, %v529_v21 }
 0x193   : > { %v527_v22 = vld [vmem:[#allocation2 + $0x18] sm:$0xff] }
 0x194   : > { %v531_v23 = vmul.f32 0.00390625, %v527_v22 }
 0x196   : > { %535 = vst.msk [vmem:[%s276_s11 + $0x18] sm:$0xff] %vm281_vm2, %v531_v23 }
 0x197 PF: > { %s16_s20 = sadd.s32 1, %s731_s20   ;;  %s875_s18 = smov %s727_s19 }
 0x198   : > { %p13_p5 = scmp.ge.s32.totalorder %s16_s20, 4   ;;  %s876_s19 = smov %s878_s21 }
 0x19a   :  { %15 = sbr.rel (!%p13_p5) target bundleno = 2 (0x2), region = 86 }

// kernel: mrgblock_res_forward.7
= control target key start
LH: loop header
LB: loop body
LE: loop exit
PB: predicated region body
PF: predicated region fallthrough
CT: control target
= control target key end

     0   :  { %s352_s6 = smov 0   ;;  %s354_s7 = smov 0   ;;  %s401_s0 = inlined_call_operand.vmem [shape: f32[2,32,256], index: 0, kind: input, shape index: {}]   ;;  %s402_s1 = inlined_call_operand.vmem [shape: f32[2,32,1], index: 1, kind: output, shape index: {}]  }
   0x1   :  { %s356_s8 = smov 0  }
   0x2 LB: > { %s23_s9 = sadd.s32 1, %s335_s7  ;;  %p283_p0 = scmp.ge.s32.totalorder %s339_s8, 1  ;;  %s339_s8 = sphi %s356_s8, %s11_s8   ;;  %s335_s7 = sphi %s354_s7, %s404_s7   ;;  %s331_s6 = sphi %s352_s6, %s403_s6  }
   0x3   : > { %p25_p1 = scmp.ge.s32.totalorder %s23_s9, 2  ;;  %p106_p2 = scmp.lt.s32.totalorder %s339_s8, 3 }
   0x5   : > { %s406_s9 = smov (%p25_p1, %s23_s9), 0  ;;  %p107_p3 = pnand %p283_p0, %p106_p2 }
   0x6   : > { %p131_p4 = scmp.lt.s32.totalorder (!%p107_p3), %s331_s6, 1  ;;  %vm149_vm0 = vcmask (!%p107_p3), 7168   ;;  %v341_v0 = vmov (!%p107_p3), 0.0  }
   0x7   : > { %110 = sbr.rel (%p107_p3) target bundleno = 182 (0xb6), region = 24  ;;  %152 = vst.msk [vmem:[#allocation2 + $0x10] sm:$0xff] (!%p107_p3), %vm149_vm0, %v341_v0  ;;  %150 = vst.msk [vmem:[#allocation2] sm:$0xff] (!%p107_p3), %vm149_vm0, %v341_v0 }
   0x8   : > { %151 = vst.msk [vmem:[#allocation2 + $0x8] sm:$0xff] (!%p107_p3), %vm149_vm0, %v341_v0  ;;  %153 = vst.msk [vmem:[#allocation2 + $0x18] sm:$0xff] (!%p107_p3), %vm149_vm0, %v341_v0 }
   0xe   : > { %s408_s6 = smov (!%p131_p4, %s331_s6), 1  ;;  %v172_v21 = vld [vmem:[#allocation2 + $0x10] sm:$0xff]  ;;  %v170_v22 = vld [vmem:[#allocation2] sm:$0xff] }
   0xf   : > { %s290_s10 = sshll.u32 %s408_s6, 6  ;;  %v173_v27 = vld [vmem:[#allocation2 + $0x18] sm:$0xff]  ;;  %v171_v28 = vld [vmem:[#allocation2 + $0x8] sm:$0xff]  ;;  %s291_s14 = sshll.u32 %s408_s6, 5 }
  0x10   : > { %s138_s13 = scalar_lea.vmem %s401_s0, %s290_s10  ;;  %s144_s17 = scalar_lea.vmem %s402_s1, %s291_s14 }
  0x11   : > { %v158_v1 = vld [vmem:[%s138_s13 + $0x20] sm:$0xff]  ;;  %v159_v2 = vld [vmem:[%s138_s13 + $0x28] sm:$0xff]  ;;  %v160_v8 = vld [vmem:[%s138_s13 + $0x30] sm:$0xff] }
  0x12   : > { %v154_v3 = vld [vmem:[%s138_s13] sm:$0xff]  ;;  %v166_v4 = vmax.f32 %v158_v1, 0.0  ;;  %v167_v5 = vmax.f32 %v159_v2, 0.0  ;;  %v155_v6 = vld [vmem:[%s138_s13 + $0x8] sm:$0xff]  ;;  %v161_v9 = vld [vmem:[%s138_s13 + $0x38] sm:$0xff]  ;;  %v168_v11 = vmax.f32 %v160_v8, 0.0 }
  0x13   : > { %v162_v7 = vmax.f32 %v154_v3, 0.0  ;;  %v163_v10 = vmax.f32 %v155_v6, 0.0  ;;  %v169_v12 = vmax.f32 %v161_v9, 0.0  ;;  %v156_v13 = vld [vmem:[%s138_s13 + $0x10] sm:$0xff]  ;;  %v157_v14 = vld [vmem:[%s138_s13 + $0x18] sm:$0xff] }
  0x14   : > { %v180_v15 = vadd.f32 %v167_v5, %v166_v4  ;;  %v164_v16 = vmax.f32 %v156_v13, 0.0  ;;  %v165_v17 = vmax.f32 %v157_v14, 0.0 }
  0x15   : > { %v174_v18 = vadd.f32 %v163_v10, %v162_v7  ;;  %v183_v19 = vadd.f32 %v169_v12, %v168_v11 }
  0x16   : > { %181 = vadd.xlane.f32.xlu1 %v180_v15  ;;  %v177_v20 = vadd.f32 %v165_v17, %v164_v16 }
  0x17   : > { %175 = vadd.xlane.f32.xlu0 %v174_v18 }
  0x1a   : > { %184 = vadd.xlane.f32.xlu1 %v183_v19 }
  0x1b   : > { %178 = vadd.xlane.f32.xlu0 %v177_v20 }
  0xa3   : > { %v182_v23 = vpop.xlane.xlu1 %181 }
  0xa4   : > { %v188_v24 = vadd.f32 %v182_v23, %v172_v21  ;;  %v176_v25 = vpop.xlane.xlu0 %175 }
  0xa5   : > { %v186_v26 = vadd.f32 %v176_v25, %v170_v22 }
  0xa6   : > { %193 = vst.msk [vmem:[#allocation2 + $0x10] sm:$0xff] %vm149_vm0, %v188_v24 }
  0xa7   : > { %191 = vst.msk [vmem:[#allocation2] sm:$0xff] %vm149_vm0, %v186_v26  ;;  %v185_v29 = vpop.xlane.xlu1 %184 }
  0xa8   : > { %v189_v30 = vadd.f32 %v185_v29, %v173_v27  ;;  %v179_v31 = vpop.xlane.xlu0 %178 }
  0xa9   : > { %v187_v32 = vadd.f32 %v179_v31, %v171_v28 }
  0xaa   : > { %194 = vst.msk [vmem:[#allocation2 + $0x18] sm:$0xff] %vm149_vm0, %v189_v30 }
  0xab   : > { %192 = vst.msk [vmem:[#allocation2 + $0x8] sm:$0xff] %vm149_vm0, %v187_v32 }
  0xad   : > { %v200_v33 = vld [vmem:[#allocation2 + $0x10] sm:$0xff] }
  0xae   : > { %v204_v34 = vmul.f32 0.00390625, %v200_v33  ;;  %v198_v35 = vld [vmem:[#allocation2] sm:$0xff] }
  0xaf   : > { %v202_v36 = vmul.f32 0.00390625, %v198_v35 }
  0xb0   : > { %208 = vst.msk [vmem:[%s144_s17 + $0x10] sm:$0xff] %vm149_vm0, %v204_v34 }
  0xb1   : > { %206 = vst.msk [vmem:[%s144_s17] sm:$0xff] %vm149_vm0, %v202_v36  ;;  %v201_v37 = vld [vmem:[#allocation2 + $0x18] sm:$0xff] }
  0xb2   : > { %v205_v38 = vmul.f32 0.00390625, %v201_v37  ;;  %v199_v39 = vld [vmem:[#allocation2 + $0x8] sm:$0xff] }
  0xb3   : > { %v203_v40 = vmul.f32 0.00390625, %v199_v39 }
  0xb4   : > { %209 = vst.msk [vmem:[%s144_s17 + $0x18] sm:$0xff] %vm149_vm0, %v205_v38 }
  0xb5   : > { %207 = vst.msk [vmem:[%s144_s17 + $0x8] sm:$0xff] %vm149_vm0, %v203_v40 }
  0xb6 PF: > { %s11_s8 = sadd.s32 1, %s339_s8   ;;  %s403_s6 = smov %s335_s7 }
  0xb7   : > { %p8_p5 = scmp.ge.s32.totalorder %s11_s8, 4   ;;  %s404_s7 = smov %s406_s9 }
  0xb9   :  { %10 = sbr.rel (!%p8_p5) target bundleno = 2 (0x2), region = 62 }

// kernel: mrgblock_res_forward.11
= control target key start
LH: loop header
LB: loop body
LE: loop exit
PB: predicated region body
PF: predicated region fallthrough
CT: control target
= control target key end

     0   :  { %s1266_s13 = smov 0   ;;  %s1360_s0 = inlined_call_operand.vmem [shape: f32[4,2,32], index: 0, kind: input, shape index: {}]   ;;  %s1361_s1 = inlined_call_operand.vmem [shape: f32[2,32], index: 1, kind: input, shape index: {}]   ;;  %s1362_s2 = inlined_call_operand.vmem [shape: bf16[4,32,96], index: 2, kind: input, shape index: {}]   ;;  %s1363_s3 = inlined_call_operand.vmem [shape: f32[4,1,96], index: 3, kind: input, shape index: {}]   ;;  %s1364_s4 = inlined_call_operand.vmem [shape: bf16[4,32,64], index: 4, kind: input, shape index: {}]   ;;  %s1365_s5 = inlined_call_operand.vmem [shape: f32[4,1,64], index: 5, kind: input, shape index: {}]   ;;  %s1366_s6 = inlined_call_operand.vmem [shape: bf16[4,32,32], index: 6, kind: input, shape index: {}]   ;;  %s1367_s7 = inlined_call_operand.vmem [shape: f32[4,1,32], index: 7, kind: input, shape index: {}]   ;;  %s1368_s8 = inlined_call_operand.vmem [shape: bf16[4,32,10], index: 8, kind: input, shape index: {}]   ;;  %s1369_s9 = inlined_call_operand.vmem [shape: f32[4,1,10], index: 9, kind: input, shape index: {}]   ;;  %s1370_s10 = inlined_call_operand.vmem [shape: f32[4,2,10], index: 10, kind: output, shape index: {}]  }
   0x1   :  { %1372 = sst [smem:[#allocation4_spill]] %s1360_s0 }
   0x2   :  { %1373 = sst [smem:[#allocation5_spill]] %s1362_s2 }
   0x3 LB: > { %1374 = sst [smem:[#allocation3_spill]] %s1203_s13  ;;  %s1023_s14 = sadd.s32 4294967295, %s1203_s13   ;;  %s1203_s13 = sphi %s1266_s13, %s20_s13  }
   0x4   : > { %p1027_p0 = scmp.ge.s32.totalorder %s1203_s13, 1  ;;  %p383_p1 = scmp.lt.s32.totalorder %s1203_s13, 5 }
   0x6   : > { %p384_p2 = pnand %p1027_p0, %p383_p1 }
   0x7   : > { %p451_p3 = scmp.lt.s32.totalorder (!%p384_p2), %s1023_s14, 3  ;;  %s1375_s0 = sld [smem:[#allocation4_spill]] (!%p384_p2) }
   0x8   : > { %387 = sbr.rel (%p384_p2) target bundleno = 1071 (0x42f), region = 60  ;;  %s1376_s2 = sld [smem:[#allocation5_spill]] (!%p384_p2) }
   0x9   : > { %p1038_p4 = scmp.ne.s32.totalorder (!%p384_p2), %s1023_s14, 0 }
   0xf   : > { %s1274_s15 = scalar_select %p451_p3, %s1023_s14, 3 }
  0x10   : > { %494 = sbr.rel (%p1038_p4) target bundleno = 23 (0x17), region = 64  ;;  %v495_v0 = vld [vmem:[%s1361_s1] sm:$0x3] (!%p1038_p4)  ;;  %vm496_vm0 = vcmask (!%p1038_p4), 254976  }
  0x11   : > { %s1028_s16 = sshll.u32 %s1274_s15, 1  ;;  %s1049_s17 = sshll.u32 %s1274_s15, 4  ;;  %497 = vst.msk [vmem:[#allocation2] sm:$0x3] (!%p1038_p4), %vm496_vm0, %v495_v0 }
  0x12   : > { %s1281_s20 = scalar_lea.vmem %s1375_s0, %s1028_s16  ;;  %s459_s23 = scalar_lea.vmem %s1376_s2, %s1049_s17 }
  0x13   : > { %s467_s29 = scalar_lea.vmem %s1364_s4, %s1049_s17  ;;  %s1300_s19 = scalar_lea.vmem %s1366_s6, %s1049_s17 }
  0x14   : > { %s478_s22 = scalar_lea.vmem %s1367_s7, %s1274_s15  ;;  %s1309_s25 = scalar_lea.vmem %s1368_s8, %s1049_s17 }
  0x15   : > { %s486_s26 = scalar_lea.vmem %s1369_s9, %s1274_s15  ;;  %s1318_s12 = scalar_lea.vmem %s1370_s10, %s1028_s16 }
  0x17 PF: > { %v1054_v1 = vld [vmem:[%s459_s23] sm:$0xff]   ;;  %v1205_v3 = vmov 0.0|0.0   ;;  %v1085_v4 = vld [vmem:[%s459_s23 + $0x8] sm:$0xff]   ;;  %vm1206_vm1 = vmmov 0   ;;  %v1207_v6 = vmov 0.0   ;;  %s1208_s0 = smov 32   ;;  %s1377_s16 = scalar_lea.vmem %s1363_s3, %s1274_s15 }
  0x18   : > { %v1062_v2 = vld [vmem:[%s467_s29] sm:$0xff]   ;;  %1153 = vmatprep.subr.bf16.mxu0 %v1205_v3  ;;  %1159 = vmatprep.subr.bf16.mxu1 %v1205_v3  ;;  %v1086_v5 = vld [vmem:[%s467_s29 + $0x8] sm:$0xff]   ;;  %vm515_vm2 = vcmask 261120   ;;  %s1378_s23 = scalar_lea.vmem %s1365_s5, %s1274_s15  ;;  %s1209_s29 = smov 96   ;;  %vm884_vm3 = vcmask 254976   ;;  %vm882_vm4 = vcmask 74752  }
  0x19   : > { %1155 = vmatpush3.bf16.msra.mxu0 %v1054_v1  ;;  %1161 = vmatpush3.bf16.msra.mxu1 %v1062_v2  ;;  %v499_v7 = vld [vmem:[#allocation2] sm:$0x3]  ;;  %v1087_v10 = vld [vmem:[%s1300_s19 + $0x8] sm:$0xff]  }
  0x1a   : > { %1156 = vmatprep.subr.bf16.mxu0 %v1205_v3  ;;  %1162 = vmatprep.subr.bf16.mxu1 %v1205_v3  ;;  %v498_v8 = vld [vmem:[%s1281_s20] sm:$0x3]  ;;  %v1088_v36 = vld [vmem:[%s1309_s25 + $0x8] sm:$0xff]  }
  0x1b   : > { %1117 = vmatprep.mubr.msk.f32.mxu0 %vm1206_vm1, %v1207_v6  ;;  %1128 = vmatprep.mubr.msk.f32.mxu1 %vm1206_vm1, %v1207_v6  ;;  %v1070_v9 = vld [vmem:[%s1300_s19] sm:$0xff]   ;;  %s1210_s19 = smov 64  }
  0x1c   : > { %683 = vrot.lane.b32.xlu0 %v499_v7, %s1208_s0  ;;  %v1039_v11 = vld [vmem:[%s1377_s16] ss:$0 sm:$0xff] }
  0x1d   : > { %1158 = vmatpush3.bf16.msra.mxu0 %v1085_v4  ;;  %1164 = vmatpush3.bf16.msra.mxu1 %v1086_v5  ;;  %v1041_v12 = vld [vmem:[%s1378_s23] ss:$0 sm:$0xff] }
  0x1e   : > { %1165 = vmatprep.subr.bf16.mxu0 %v1205_v3  ;;  %1171 = vmatprep.subr.bf16.mxu1 %v1205_v3  ;;  %v1044_v30 = vld [vmem:[%s478_s22] ss:$0 sm:$0xff] }
  0x1f   : > { %v1078_v31 = vld [vmem:[%s1309_s25] sm:$0xff]  }
  0x20   : > { %1118 = vmatmul.mubr.msk.f32.vlgmr.msra.gmra.mrb[0].mxu0 %vm515_vm2, %v498_v8  ;;  %1129 = vmatmul.mubr.msk.f32.vlgmr.msra.gmra.mrb[0].mxu1 %vm515_vm2, %v499_v7  ;;  %v1045_v43 = vld [vmem:[%s486_s26] ss:$0 sm:$0xff] }
  0x21   : > { %1139 = vmatprep.mubr.msk.f32.mxu0 %vm1206_vm1, %v1207_v6  ;;  %1150 = vmatprep.mubr.msk.f32.mxu1 %vm1206_vm1, %v1207_v6 }
  0x22   : > { %1167 = vmatpush3.bf16.msra.mxu0 %v1070_v9  ;;  %1173 = vmatpush3.bf16.msra.mxu1 %v1078_v31 }
  0x23   : > { %1168 = vmatprep.subr.bf16.mxu0 %v1205_v3  ;;  %1174 = vmatprep.subr.bf16.mxu1 %v1205_v3 }
  0x26   : > { %1170 = vmatpush3.bf16.msra.mxu0 %v1087_v10  ;;  %1176 = vmatpush3.bf16.msra.mxu1 %v1088_v36 }
  0x8e   : > { %v684_v24 = vpop.permute.xlu0 %683 }
  0xf3   : > { %v585_v13 = vpop.f32.mrb[0].mxu0  ;;  %v673_v14 = vpop.f32.mrb[0].mxu1 }
  0xf4   : > { %v586_v15 = vadd.f32 %v1039_v11, %v585_v13  ;;  %v674_v16 = vadd.f32 %v1041_v12, %v673_v14  ;;  %v1119_v17 = vpop.f32.mrb[1].mxu0  ;;  %v1130_v18 = vpop.f32.mrb[1].mxu1 }
  0xf6   : > { %v677_v19 = vadd.f32 %v674_v16, %v586_v15 }
  0xf8   : > { %v678_v20 = vsub.f32 0.0, %v677_v19 }
  0xfa   : > { %v679_v21 = vmul.f32 1.442695, %v678_v20 }
  0xfc   : > { %1191 = vpow2.f32 %v679_v21 }
 0x106   : > { %v1192_v22 = vpop.eup %1191 }
 0x107   : > { %v681_v23 = vadd.f32 1.0, %v1192_v22 }
 0x109   : > { %1193 = vrcp.f32 %v681_v23 }
 0x113   : > { %v1194_v25 = vpop.eup %1193 }
 0x114   : > { %v686_v26 = vmul.f32 %v1194_v25, %v684_v24  ;;  %v786_v38 = vsub.f32 1.0, %v1194_v25 }
 0x116   : > { %696 = vrot.lane.b32.xlu0 %v686_v26, %s1209_s29  ;;  %v787_v40 = vmul.f32 %v786_v38, %v499_v7 }
 0x188   : > { %v697_v27 = vpop.permute.xlu0 %696 }
 0x189   : > { %1140 = vmatmul.mubr.msk.f32.vlgmr.msra.gmra.mrb[2].mxu0 %vm515_vm2, %v697_v27 }
 0x25c   : > { %v766_v28 = vpop.f32.mrb[2].mxu0 }
 0x25d   : > { %771 = vrot.lane.b32.xlu1 %v766_v28, %s1210_s19  ;;  %v1141_v29 = vpop.f32.mrb[3].mxu0 }
 0x261   : > { %781 = vrot.lane.b32.xlu1 %v1044_v30, %s1210_s19 }
 0x2cf   : > { %v772_v32 = vpop.permute.xlu1 %771 }
 0x2d0   : > { %v774_v33 = vadd.f32 %v772_v32, %v586_v15 }
 0x2d3   : > { %v782_v34 = vpop.permute.xlu1 %781 }
 0x2d4   : > { %v784_v35 = vadd.f32 %v782_v34, %v774_v33 }
 0x2d6   : > { %1195 = vtanh.f32 %v784_v35 }
 0x2e0   : > { %v1196_v37 = vpop.eup %1195 }
 0x2e1   : > { %789 = vrot.lane.b32.xlu0 %v1196_v37, %s1210_s19 }
 0x353   : > { %v790_v39 = vpop.permute.xlu0 %789 }
 0x354   : > { %v792_v41 = vmul.f32 %v1194_v25, %v790_v39 }
 0x356   : > { %v793_v42 = vadd.f32 %v792_v41, %v787_v40 }
 0x358   : > { %885 = vst.msk [vmem:[#allocation2] sm:$0x3] %vm884_vm3, %v793_v42  ;;  %1151 = vmatmul.mubr.msk.f32.vlgmr.msra.gmra.mrb[2].mxu1 %vm515_vm2, %v793_v42 }
 0x42b   : > { %v878_v44 = vpop.f32.mrb[2].mxu1 }
 0x42c   : > { %v879_v45 = vadd.f32 %v1045_v43, %v878_v44  ;;  %v1152_v46 = vpop.f32.mrb[3].mxu1 }
 0x42e   : > { %883 = vst.msk [vmem:[%s1318_s12] sm:$0x3] %vm882_vm4, %v879_v45 }
 0x42f PF: > { %s1379_s25 = sld [smem:[#allocation3_spill]] }
 0x435   : > { %s20_s13 = sadd.s32 1, %s1379_s25  }
 0x436   : > { %p17_p5 = scmp.ge.s32.totalorder %s20_s13, 6  }
 0x438   :  { %19 = sbr.rel (!%p17_p5) target bundleno = 3 (0x3), region = 118 }

</bundles_post_ra>
